<compile_context>
chip_gen: v5e
topology: v5e:2x2
jax: 0.10.0
libtpu: 0.0.40
codegen_flags: <defaults>
</compile_context>

<pallas_src>
import math
from functools import partial

import jax
import jax.numpy as jnp
from jax.experimental import pallas as pl
from jax.experimental.pallas import tpu as pltpu


_PAD = 16                             # bf16-sublane-aligned left zero-pad in the halo buffer

_VMEM_LIMIT_CACHE = None


def _vmem_limit_bytes():
    """~80% of per-core VMEM, clamped to [32 MiB, 100 MiB]; safe fallback = 48 MiB."""
    global _VMEM_LIMIT_CACHE
    if _VMEM_LIMIT_CACHE is None:
        cap = None
        try:
            cap = getattr(pltpu.get_tpu_info(), "vmem_capacity_bytes", None)
        except Exception:
            cap = None
        if cap:
            lim = int(cap * 0.8)
            lim = max(32 * 1024 * 1024, min(lim, 100 * 1024 * 1024))
        else:
            lim = 48 * 1024 * 1024    # fits v7x's 64 MiB / TC
        _VMEM_LIMIT_CACHE = lim
    return _VMEM_LIMIT_CACHE


def _round_up(v, m):
    return ((v + m - 1) // m) * m


# --------------------------------------------------------------------------
# Shared in-kernel 3x3 "same" conv from a zero-padded bf16 VMEM buffer.
#   xp_ref : (n, H+2, W+2*_PAD, Cin) bf16, image at rows [1,H], cols [_PAD, _PAD+W)
#   get_w(k): (Cin, Cout) bf16 weight for tap k = kh*3 + kw
# The n (batch) dim is folded into the matmul M dimension.  Returns (n, H, W, Cout) f32.
# --------------------------------------------------------------------------
def _conv3x3_acc(xp_ref, get_w, n, H, W, cout):
    acc = jnp.zeros((n * H * W, cout), jnp.float32)
    for kw in range(3):
        c0 = _PAD - 1 + kw
        xs = xp_ref[:, :, c0:c0 + W, :]                   # (n, H+2, W, Cin): one shifted slab / kw
        for kh in range(3):
            m = xs[:, kh:kh + H].reshape(n * H * W, -1)   # row window -> (M, Cin)
            acc = acc + jnp.dot(m, get_w(kh * 3 + kw),
                                preferred_element_type=jnp.float32)
    return acc.reshape(n, H, W, cout)


# --------------------------------------------------------------------------
# Standalone fused conv3x3 (+bias, optional ReLU / scale / residual add).
# Grid = (image, output-channel tile).  Halo buffer built once per image (co == 0).
# --------------------------------------------------------------------------
def _conv3x3_kernel(apply_relu, scale, has_residual, *refs):
    if has_residual:
        x_ref, w_ref, b_ref, res_ref, o_ref, xp_ref = refs
    else:
        x_ref, w_ref, b_ref, o_ref, xp_ref = refs

    _, H, W, cout = o_ref.shape
    co = pl.program_id(1)

    # Build the zero-padded bf16 halo buffer once per image (not once per cout tile).
    # Safe under v7x megacore: only the n axis is 'parallel', co is 'arbitrary', so
    # co == 0 is always executed (in order) for every image a core processes.
    @pl.when(co == 0)
    def _():
        xp_ref[...] = jnp.zeros_like(xp_ref)
        xp_ref[:, 1:H + 1, _PAD:_PAD + W, :] = x_ref[...].astype(jnp.bfloat16)

    acc = _conv3x3_acc(xp_ref, lambda k: w_ref[k], 1, H, W, cout)
    acc = acc + b_ref[...]                                # (1,H,W,Co) + (1,Co), f32
    if apply_relu:
        acc = jnp.maximum(acc, 0.0)
    if scale is not None:
        acc = acc * jnp.float32(scale)
    if has_residual:
        acc = acc + res_ref[...]
    o_ref[...] = acc.astype(o_ref.dtype)


@partial(jax.jit, static_argnames=("apply_relu", "scale"))
def conv3x3(x, w, b, residual=None, *, apply_relu=False, scale=None):
    """3x3 'same' conv. x: (N,H,W,Cin) f32; w: (9,Cin,Cout) bf16; b: (1,Cout) f32."""
    N, H, W, Cin = x.shape
    Cout = w.shape[-1]

    cin_p = max(8, _round_up(Cin, 8))                     # sublane-friendly K (first conv: 3 -> 8)
    if cin_p != Cin:
        x = jnp.pad(x, ((0, 0), (0, 0), (0, 0), (0, cin_p - Cin)))
        w = jnp.pad(w, ((0, 0), (0, cin_p - Cin), (0, 0)))

    cout_p = max(128, _round_up(Cout, 128))               # lane-dense output (last conv: 3 -> 128)
    if cout_p != Cout:
        w = jnp.pad(w, ((0, 0), (0, 0), (0, cout_p - Cout)))
        b = jnp.pad(b, ((0, 0), (0, cout_p - Cout)))
        if residual is not None:
            residual = jnp.pad(residual, ((0, 0), (0, 0), (0, 0), (0, cout_p - Cout)))

    co_tile = 256 if cout_p % 256 == 0 else cout_p
    n_co = cout_p // co_tile
    grid = (N, n_co)

    kernel = partial(_conv3x3_kernel, apply_relu, scale, residual is not None)

    in_specs = [
        pl.BlockSpec((1, H, W, cin_p), lambda n, co: (n, 0, 0, 0)),
        pl.BlockSpec((9, cin_p, co_tile), lambda n, co: (0, 0, co)),
        pl.BlockSpec((1, co_tile), lambda n, co: (0, co)),
    ]
    args = [x, w, b]
    if residual is not None:
        in_specs.append(pl.BlockSpec((1, H, W, co_tile), lambda n, co: (n, 0, 0, co)))
        args.append(residual)

    flops = int(2 * 9 * N * H * W * cin_p * cout_p)
    bytes_accessed = int(N * H * W * cin_p * 4 + 9 * cin_p * cout_p * 2 + cout_p * 4
                         + N * H * W * cout_p * 4
                         + (N * H * W * cout_p * 4 if residual is not None else 0))

    out = pl.pallas_call(
        kernel,
        out_shape=jax.ShapeDtypeStruct((N, H, W, cout_p), jnp.float32),
        grid=grid,
        in_specs=in_specs,
        out_specs=pl.BlockSpec((1, H, W, co_tile), lambda n, co: (n, 0, 0, co)),
        scratch_shapes=[pltpu.VMEM((1, H + 2, W + 2 * _PAD, cin_p), jnp.bfloat16)],
        compiler_params=pltpu.CompilerParams(
            dimension_semantics=("parallel", "arbitrary"),
            vmem_limit_bytes=_vmem_limit_bytes()),
        cost_estimate=pl.CostEstimate(flops=flops, transcendentals=0,
                                      bytes_accessed=bytes_accessed),
    )(*args)

    return out[..., :Cout] if cout_p != Cout else out


# --------------------------------------------------------------------------
# Fused residual trunk: 32 x [conv -> ReLU -> conv, *0.1, +identity] in ONE call.
# grid = (n_blocks,) only.  The whole batch of feature maps stays resident in the
# revisited f32 output block (batch folded into the matmul M dim); per-block bf16
# weight slabs are streamed (double-buffered) from HBM exactly once.
# --------------------------------------------------------------------------
def _res_trunk_kernel(x_hbm, w_ref, b_ref, o_ref, xp_ref, copy_sem):
    N, H, W, C = o_ref.shape
    blk = pl.program_id(0)

    @pl.when(blk == 0)
    def _():
        # Pull the initial feature map straight into the resident output block
        # (it acts as the running f32 feature map for the whole trunk) and zero
        # the halo buffer pads (they are never overwritten afterwards).
        cp = pltpu.make_async_copy(x_hbm, o_ref, copy_sem.at[0])
        cp.start()
        cp.wait()
        xp_ref[...] = jnp.zeros_like(xp_ref)

    b = b_ref[blk]                                        # (2, C) f32, dynamic row of resident bias

    # conv1 + bias + ReLU  (bf16 matmul inputs, f32 accumulation; M = N*H*W)
    xp_ref[:, 1:H + 1, _PAD:_PAD + W, :] = o_ref[...].astype(jnp.bfloat16)
    h = _conv3x3_acc(xp_ref, lambda k: w_ref[0, k], N, H, W, C)
    h = jnp.maximum(h + b[0], 0.0)

    # conv2 + bias, *0.1, + identity (residual accumulation stays f32 in o_ref)
    xp_ref[:, 1:H + 1, _PAD:_PAD + W, :] = h.astype(jnp.bfloat16)
    y = _conv3x3_acc(xp_ref, lambda k: w_ref[0, 9 + k], N, H, W, C)
    o_ref[...] = o_ref[...] + 0.1 * (y + b[1])


@jax.jit
def res_trunk(x, wts, biases):
    """x: (N,H,W,C) f32; wts: (n_blocks,18,C,C) bf16; biases: (n_blocks,2,C) f32."""
    N, H, W, C = x.shape
    n_blocks = wts.shape[0]

    # The whole (N,H,W,C) f32 feature map + its bf16 halo + a streamed weight slab
    # must fit VMEM.  Fail loudly instead of silently OOM'ing at lowering time.
    feat_bytes = N * H * W * C * 4
    halo_bytes = N * (H + 2) * (W + 2 * _PAD) * C * 2
    w_stream_bytes = 2 * 18 * C * C * 2                   # double-buffered per-block slab
    est = 2 * feat_bytes + halo_bytes + w_stream_bytes + 4 * feat_bytes
    if est > _vmem_limit_bytes():
        # TODO(synk): strip-mine the trunk over +/-1-row halo'd row strips for large images.
        raise NotImplementedError(
            f"fused residual trunk needs ~{est >> 20} MiB VMEM "
            f"(limit {_vmem_limit_bytes() >> 20} MiB); image too large for the fused trunk")

    flops = int(2 * 2 * 9 * n_blocks * N * H * W * C * C)
    bytes_accessed = int(2 * feat_bytes                   # feature map in (DMA) + final out
                         + n_blocks * 18 * C * C * 2      # weights streamed exactly once
                         + n_blocks * 2 * C * 4)

    return pl.pallas_call(
        _res_trunk_kernel,
        out_shape=jax.ShapeDtypeStruct((N, H, W, C), jnp.float32),
        grid=(n_blocks,),
        in_specs=[
            pl.BlockSpec(memory_space=pl.ANY),                       # x stays in HBM (manual DMA)
            pl.BlockSpec((1, 18, C, C), lambda b: (b, 0, 0, 0)),     # streamed per block
            pl.BlockSpec((n_blocks, 2, C), lambda b: (0, 0, 0)),     # all biases resident (64 KiB)
        ],
        out_specs=pl.BlockSpec((N, H, W, C), lambda b: (0, 0, 0, 0)),  # resident accumulator
        scratch_shapes=[
            pltpu.VMEM((N, H + 2, W + 2 * _PAD, C), jnp.bfloat16),   # halo'd bf16 matmul input
            pltpu.SemaphoreType.DMA((1,)),
        ],
        compiler_params=pltpu.CompilerParams(
            dimension_semantics=("arbitrary",),
            vmem_limit_bytes=_vmem_limit_bytes()),
        cost_estimate=pl.CostEstimate(flops=flops, transcendentals=0,
                                      bytes_accessed=bytes_accessed),
    )(x, wts, biases)


# --------------------------------------------------------------------------
# Plain-JAX glue: PixelShuffle (pure data movement) + parameters.
# --------------------------------------------------------------------------
def pixel_shuffle_nhwc(x, r):
    # out[n, h*r+i, w*r+j, c] = x[n, h, w, c*r*r + i*r + j]   (matches torch)
    N, H, W, C = x.shape
    c = C // (r * r)
    x = x.reshape(N, H, W, c, r, r)
    x = jnp.transpose(x, (0, 1, 4, 2, 5, 3))
    return x.reshape(N, H * r, W * r, c)


def init_conv(key, cin, cout):
    kw, kb = jax.random.split(key)
    std = 1.0 / math.sqrt(cin * 9)
    w = (jax.random.normal(kw, (9, cin, cout), jnp.float32) * std).astype(jnp.bfloat16)
    b = jax.random.normal(kb, (1, cout), jnp.float32) * 0.1
    return w, b


def init_edsr_params(key):
    n_feats, n_blocks, n_colors = 256, 32, 3
    keys = iter(jax.random.split(key, 5 + 2 * n_blocks))
    conv_input = init_conv(next(keys), n_colors, n_feats)
    block_ws, block_bs = [], []
    for _ in range(n_blocks):
        w1, b1 = init_conv(next(keys), n_feats, n_feats)
        w2, b2 = init_conv(next(keys), n_feats, n_feats)
        block_ws.append(jnp.concatenate([w1, w2], axis=0))   # (18, C, C) bf16
        block_bs.append(jnp.stack([b1[0], b2[0]], axis=0))   # (2, C)  f32
    return {
        "conv_input": conv_input,
        "trunk_w": jnp.stack(block_ws),                      # (32, 18, C, C) bf16
        "trunk_b": jnp.stack(block_bs),                      # (32, 2, C)  f32
        "conv_mid": init_conv(next(keys), n_feats, n_feats),
        "up_convs": [init_conv(next(keys), n_feats, 4 * n_feats) for _ in range(2)],
        "conv_out": init_conv(next(keys), n_feats, n_colors),
    }


def edsr_forward(x_nchw, params):
    x = jnp.transpose(x_nchw, (0, 2, 3, 1)).astype(jnp.float32)       # NCHW -> NHWC
    out = conv3x3(x, *params["conv_input"])
    skip = out
    out = res_trunk(out, params["trunk_w"], params["trunk_b"])        # 32 fused res-blocks
    out = conv3x3(out, *params["conv_mid"], residual=skip)            # conv_mid + skip
    for (wu, bu) in params["up_convs"]:
        out = conv3x3(out, wu, bu)
        out = pixel_shuffle_nhwc(out, 2)
    out = conv3x3(out, *params["conv_out"])
    return jnp.transpose(out, (0, 3, 1, 2))                           # NHWC -> NCHW


# --------------------------------------------------------------------------
# Pure-JAX reference (lax.conv, same bf16 cast points) for the self-check.
# --------------------------------------------------------------------------
def _ref_conv(x, w_bf16, b, relu=False, scale=None, residual=None):
    w4 = w_bf16.reshape(3, 3, w_bf16.shape[1], w_bf16.shape[2])       # HWIO
    y = jax.lax.conv_general_dilated(
        x.astype(jnp.bfloat16), w4, (1, 1), "SAME",
        dimension_numbers=("NHWC", "HWIO", "NHWC"),
        preferred_element_type=jnp.float32) + b.reshape(1, 1, 1, -1)
    if relu:
        y = jnp.maximum(y, 0.0)
    if scale is not None:
        y = y * scale
    if residual is not None:
        y = y + residual
    return y


def edsr_reference(x_nchw, params):
    x = jnp.transpose(x_nchw, (0, 2, 3, 1)).astype(jnp.float32)
    out = _ref_conv(x, *params["conv_input"])
    skip = out
    tw, tb = params["trunk_w"], params["trunk_b"]
    for i in range(tw.shape[0]):
        h = _ref_conv(out, tw[i, :9], tb[i, 0:1], relu=True)
        out = _ref_conv(h, tw[i, 9:], tb[i, 1:2], scale=0.1, residual=out)
    out = _ref_conv(out, *params["conv_mid"], residual=skip)
    for (wu, bu) in params["up_convs"]:
        out = _ref_conv(out, wu, bu)
        out = pixel_shuffle_nhwc(out, 2)
    out = _ref_conv(out, *params["conv_out"])
    return jnp.transpose(out, (0, 3, 1, 2))


if __name__ == "__main__":
    key = jax.random.PRNGKey(0)
    k_params, k_x = jax.random.split(key)

    params = init_edsr_params(k_params)
    x = jax.random.normal(k_x, (2, 3, 8, 8), jnp.float32)             # NCHW, like the torch module

    out = jax.block_until_ready(edsr_forward(x, params))
    assert out.shape == (2, 3, 32, 32), out.shape                     # x4 upscale, 3 channels

    ref = jax.block_until_ready(edsr_reference(x, params))
    err = float(jnp.max(jnp.abs(out - ref)))
    ref_scale = float(jnp.max(jnp.abs(ref)))
    assert err <= 2e-2 * max(ref_scale, 1.0), (err, ref_scale)

    print("KERNEL_OK")
</pallas_src>

<mosaic_0001>
module attributes {stable_mosaic.version = 11 : i64} {
  func.func @_conv3x3_kernel(%arg0: i32, %arg1: i32, %arg2: memref<1x8x8x8xf32, #tpu.memory_space<vmem>>, %arg3: memref<9x8x256xbf16, #tpu.memory_space<vmem>>, %arg4: memref<1x256xf32, #tpu.memory_space<vmem>>, %arg5: memref<1x8x8x256xf32, #tpu.memory_space<vmem>>, %arg6: memref<1x10x40x8xbf16, #tpu.memory_space<vmem>>) attributes {dimension_semantics = [#tpu.dimension_semantics<parallel>, #tpu.dimension_semantics<arbitrary>], iteration_bounds = array<i64: 2, 1>, scalar_prefetch = 0 : i64, scratch_operands = 1 : i64, tpu.core_type = #tpu.core_type<tc>, window_params = [{transform_indices = @transform_0, window_bounds = array<i64: 1, 8, 8, 8>}, {transform_indices = @transform_1, window_bounds = array<i64: 9, 8, 256>}, {transform_indices = @transform_2, window_bounds = array<i64: 1, 256>}, {transform_indices = @transform_3, window_bounds = array<i64: 1, 8, 8, 256>}]} {
    %c0_i32 = arith.constant 0 : i32
    %0 = arith.cmpi eq, %arg1, %c0_i32 : i32
    %1 = arith.extui %0 : i1 to i32
    %c0_i32_0 = arith.constant 0 : i32
    %2 = arith.cmpi ne, %1, %c0_i32_0 : i32
    scf.if %2 {
      %cst_43 = arith.constant 0.000000e+00 : bf16
      %67 = vector.broadcast %cst_43 : bf16 to vector<1x10x40x8xbf16>
      %c0_44 = arith.constant 0 : index
      %c0_45 = arith.constant 0 : index
      %c0_46 = arith.constant 0 : index
      %c0_47 = arith.constant 0 : index
      %68 = vector.load %arg6[%c0_44, %c0_45, %c0_46, %c0_47] : memref<1x10x40x8xbf16, #tpu.memory_space<vmem>>, vector<1x10x40x8xbf16>
      tpu.vector_store %arg6[%c0_44, %c0_45, %c0_46, %c0_47], %67 {strides = array<i32>} : memref<1x10x40x8xbf16, #tpu.memory_space<vmem>>, vector<1x10x40x8xbf16>,
      %c0_48 = arith.constant 0 : index
      %c0_49 = arith.constant 0 : index
      %c0_50 = arith.constant 0 : index
      %c0_51 = arith.constant 0 : index
      %69 = vector.load %arg2[%c0_48, %c0_49, %c0_50, %c0_51] : memref<1x8x8x8xf32, #tpu.memory_space<vmem>>, vector<1x8x8x8xf32>
      %70 = arith.truncf %69 : vector<1x8x8x8xf32> to vector<1x8x8x8xbf16>
      %c0_52 = arith.constant 0 : index
      %c1_53 = arith.constant 1 : index
      %c16_54 = arith.constant 16 : index
      %c0_55 = arith.constant 0 : index
      %71 = vector.load %arg6[%c0_52, %c1_53, %c16_54, %c0_55] : memref<1x10x40x8xbf16, #tpu.memory_space<vmem>>, vector<1x8x8x8xbf16>
      tpu.vector_store %arg6[%c0_52, %c1_53, %c16_54, %c0_55], %70 {strides = array<i32>} : memref<1x10x40x8xbf16, #tpu.memory_space<vmem>>, vector<1x8x8x8xbf16>,
    } else {
    }
    %cst = arith.constant 0.000000e+00 : f32
    %3 = vector.broadcast %cst : f32 to vector<64x256xf32>
    %c0 = arith.constant 0 : index
    %c0_1 = arith.constant 0 : index
    %c15 = arith.constant 15 : index
    %c0_2 = arith.constant 0 : index
    %4 = vector.load %arg6[%c0, %c0_1, %c15, %c0_2] : memref<1x10x40x8xbf16, #tpu.memory_space<vmem>>, vector<1x10x8x8xbf16>
    %5 = vector.extract_strided_slice %4 {offsets = [0, 0, 0, 0], sizes = [1, 8, 8, 8], strides = [1, 1, 1, 1]} : vector<1x10x8x8xbf16> to vector<1x8x8x8xbf16>
    %6 = vector.shape_cast %5 : vector<1x8x8x8xbf16> to vector<64x8xbf16>
    %c0_3 = arith.constant 0 : index
    %c0_4 = arith.constant 0 : index
    %c0_5 = arith.constant 0 : index
    %7 = vector.load %arg3[%c0_3, %c0_4, %c0_5] : memref<9x8x256xbf16, #tpu.memory_space<vmem>>, vector<1x8x256xbf16>
    %8 = vector.shape_cast %7 : vector<1x8x256xbf16> to vector<8x256xbf16>
    %cst_6 = arith.constant dense<0.000000e+00> : vector<64x256xf32>
    %9 = tpu.matmul %6, %8, %cst_6 {dimension_numbers = #tpu.dot_dimension_numbers<[1], [0], [0], [1], [0, 0, 1, 1], [], []>} : vector<64x8xbf16>, vector<8x256xbf16>, vector<64x256xf32> -> vector<64x256xf32>
    %10 = arith.addf %3, %9 : vector<64x256xf32>
    %11 = vector.extract_strided_slice %4 {offsets = [0, 1, 0, 0], sizes = [1, 8, 8, 8], strides = [1, 1, 1, 1]} : vector<1x10x8x8xbf16> to vector<1x8x8x8xbf16>
    %12 = vector.shape_cast %11 : vector<1x8x8x8xbf16> to vector<64x8xbf16>
    %c3 = arith.constant 3 : index
    %c0_7 = arith.constant 0 : index
    %c0_8 = arith.constant 0 : index
    %13 = vector.load %arg3[%c3, %c0_7, %c0_8] : memref<9x8x256xbf16, #tpu.memory_space<vmem>>, vector<1x8x256xbf16>
    %14 = vector.shape_cast %13 : vector<1x8x256xbf16> to vector<8x256xbf16>
    %cst_9 = arith.constant dense<0.000000e+00> : vector<64x256xf32>
    %15 = tpu.matmul %12, %14, %cst_9 {dimension_numbers = #tpu.dot_dimension_numbers<[1], [0], [0], [1], [0, 0, 1, 1], [], []>} : vector<64x8xbf16>, vector<8x256xbf16>, vector<64x256xf32> -> vector<64x256xf32>
    %16 = arith.addf %10, %15 : vector<64x256xf32>
    %17 = vector.extract_strided_slice %4 {offsets = [0, 2, 0, 0], sizes = [1, 8, 8, 8], strides = [1, 1, 1, 1]} : vector<1x10x8x8xbf16> to vector<1x8x8x8xbf16>
    %18 = vector.shape_cast %17 : vector<1x8x8x8xbf16> to vector<64x8xbf16>
    %c6 = arith.constant 6 : index
    %c0_10 = arith.constant 0 : index
    %c0_11 = arith.constant 0 : index
    %19 = vector.load %arg3[%c6, %c0_10, %c0_11] : memref<9x8x256xbf16, #tpu.memory_space<vmem>>, vector<1x8x256xbf16>
    %20 = vector.shape_cast %19 : vector<1x8x256xbf16> to vector<8x256xbf16>
    %cst_12 = arith.constant dense<0.000000e+00> : vector<64x256xf32>
    %21 = tpu.matmul %18, %20, %cst_12 {dimension_numbers = #tpu.dot_dimension_numbers<[1], [0], [0], [1], [0, 0, 1, 1], [], []>} : vector<64x8xbf16>, vector<8x256xbf16>, vector<64x256xf32> -> vector<64x256xf32>
    %22 = arith.addf %16, %21 : vector<64x256xf32>
    %c0_13 = arith.constant 0 : index
    %c0_14 = arith.constant 0 : index
    %c16 = arith.constant 16 : index
    %c0_15 = arith.constant 0 : index
    %23 = vector.load %arg6[%c0_13, %c0_14, %c16, %c0_15] : memref<1x10x40x8xbf16, #tpu.memory_space<vmem>>, vector<1x10x8x8xbf16>
    %24 = vector.extract_strided_slice %23 {offsets = [0, 0, 0, 0], sizes = [1, 8, 8, 8], strides = [1, 1, 1, 1]} : vector<1x10x8x8xbf16> to vector<1x8x8x8xbf16>
    %25 = vector.shape_cast %24 : vector<1x8x8x8xbf16> to vector<64x8xbf16>
    %c1 = arith.constant 1 : index
    %c0_16 = arith.constant 0 : index
    %c0_17 = arith.constant 0 : index
    %26 = vector.load %arg3[%c1, %c0_16, %c0_17] : memref<9x8x256xbf16, #tpu.memory_space<vmem>>, vector<1x8x256xbf16>
    %27 = vector.shape_cast %26 : vector<1x8x256xbf16> to vector<8x256xbf16>
    %cst_18 = arith.constant dense<0.000000e+00> : vector<64x256xf32>
    %28 = tpu.matmul %25, %27, %cst_18 {dimension_numbers = #tpu.dot_dimension_numbers<[1], [0], [0], [1], [0, 0, 1, 1], [], []>} : vector<64x8xbf16>, vector<8x256xbf16>, vector<64x256xf32> -> vector<64x256xf32>
    %29 = arith.addf %22, %28 : vector<64x256xf32>
    %30 = vector.extract_strided_slice %23 {offsets = [0, 1, 0, 0], sizes = [1, 8, 8, 8], strides = [1, 1, 1, 1]} : vector<1x10x8x8xbf16> to vector<1x8x8x8xbf16>
    %31 = vector.shape_cast %30 : vector<1x8x8x8xbf16> to vector<64x8xbf16>
    %c4 = arith.constant 4 : index
    %c0_19 = arith.constant 0 : index
    %c0_20 = arith.constant 0 : index
    %32 = vector.load %arg3[%c4, %c0_19, %c0_20] : memref<9x8x256xbf16, #tpu.memory_space<vmem>>, vector<1x8x256xbf16>
    %33 = vector.shape_cast %32 : vector<1x8x256xbf16> to vector<8x256xbf16>
    %cst_21 = arith.constant dense<0.000000e+00> : vector<64x256xf32>
    %34 = tpu.matmul %31, %33, %cst_21 {dimension_numbers = #tpu.dot_dimension_numbers<[1], [0], [0], [1], [0, 0, 1, 1], [], []>} : vector<64x8xbf16>, vector<8x256xbf16>, vector<64x256xf32> -> vector<64x256xf32>
    %35 = arith.addf %29, %34 : vector<64x256xf32>
    %36 = vector.extract_strided_slice %23 {offsets = [0, 2, 0, 0], sizes = [1, 8, 8, 8], strides = [1, 1, 1, 1]} : vector<1x10x8x8xbf16> to vector<1x8x8x8xbf16>
    %37 = vector.shape_cast %36 : vector<1x8x8x8xbf16> to vector<64x8xbf16>
    %c7 = arith.constant 7 : index
    %c0_22 = arith.constant 0 : index
    %c0_23 = arith.constant 0 : index
    %38 = vector.load %arg3[%c7, %c0_22, %c0_23] : memref<9x8x256xbf16, #tpu.memory_space<vmem>>, vector<1x8x256xbf16>
    %39 = vector.shape_cast %38 : vector<1x8x256xbf16> to vector<8x256xbf16>
    %cst_24 = arith.constant dense<0.000000e+00> : vector<64x256xf32>
    %40 = tpu.matmul %37, %39, %cst_24 {dimension_numbers = #tpu.dot_dimension_numbers<[1], [0], [0], [1], [0, 0, 1, 1], [], []>} : vector<64x8xbf16>, vector<8x256xbf16>, vector<64x256xf32> -> vector<64x256xf32>
    %41 = arith.addf %35, %40 : vector<64x256xf32>
    %c0_25 = arith.constant 0 : index
    %c0_26 = arith.constant 0 : index
    %c17 = arith.constant 17 : index
    %c0_27 = arith.constant 0 : index
    %42 = vector.load %arg6[%c0_25, %c0_26, %c17, %c0_27] : memref<1x10x40x8xbf16, #tpu.memory_space<vmem>>, vector<1x10x8x8xbf16>
    %43 = vector.extract_strided_slice %42 {offsets = [0, 0, 0, 0], sizes = [1, 8, 8, 8], strides = [1, 1, 1, 1]} : vector<1x10x8x8xbf16> to vector<1x8x8x8xbf16>
    %44 = vector.shape_cast %43 : vector<1x8x8x8xbf16> to vector<64x8xbf16>
    %c2 = arith.constant 2 : index
    %c0_28 = arith.constant 0 : index
    %c0_29 = arith.constant 0 : index
    %45 = vector.load %arg3[%c2, %c0_28, %c0_29] : memref<9x8x256xbf16, #tpu.memory_space<vmem>>, vector<1x8x256xbf16>
    %46 = vector.shape_cast %45 : vector<1x8x256xbf16> to vector<8x256xbf16>
    %cst_30 = arith.constant dense<0.000000e+00> : vector<64x256xf32>
    %47 = tpu.matmul %44, %46, %cst_30 {dimension_numbers = #tpu.dot_dimension_numbers<[1], [0], [0], [1], [0, 0, 1, 1], [], []>} : vector<64x8xbf16>, vector<8x256xbf16>, vector<64x256xf32> -> vector<64x256xf32>
    %48 = arith.addf %41, %47 : vector<64x256xf32>
    %49 = vector.extract_strided_slice %42 {offsets = [0, 1, 0, 0], sizes = [1, 8, 8, 8], strides = [1, 1, 1, 1]} : vector<1x10x8x8xbf16> to vector<1x8x8x8xbf16>
    %50 = vector.shape_cast %49 : vector<1x8x8x8xbf16> to vector<64x8xbf16>
    %c5 = arith.constant 5 : index
    %c0_31 = arith.constant 0 : index
    %c0_32 = arith.constant 0 : index
    %51 = vector.load %arg3[%c5, %c0_31, %c0_32] : memref<9x8x256xbf16, #tpu.memory_space<vmem>>, vector<1x8x256xbf16>
    %52 = vector.shape_cast %51 : vector<1x8x256xbf16> to vector<8x256xbf16>
    %cst_33 = arith.constant dense<0.000000e+00> : vector<64x256xf32>
    %53 = tpu.matmul %50, %52, %cst_33 {dimension_numbers = #tpu.dot_dimension_numbers<[1], [0], [0], [1], [0, 0, 1, 1], [], []>} : vector<64x8xbf16>, vector<8x256xbf16>, vector<64x256xf32> -> vector<64x256xf32>
    %54 = arith.addf %48, %53 : vector<64x256xf32>
    %55 = vector.extract_strided_slice %42 {offsets = [0, 2, 0, 0], sizes = [1, 8, 8, 8], strides = [1, 1, 1, 1]} : vector<1x10x8x8xbf16> to vector<1x8x8x8xbf16>
    %56 = vector.shape_cast %55 : vector<1x8x8x8xbf16> to vector<64x8xbf16>
    %c8 = arith.constant 8 : index
    %c0_34 = arith.constant 0 : index
    %c0_35 = arith.constant 0 : index
    %57 = vector.load %arg3[%c8, %c0_34, %c0_35] : memref<9x8x256xbf16, #tpu.memory_space<vmem>>, vector<1x8x256xbf16>
    %58 = vector.shape_cast %57 : vector<1x8x256xbf16> to vector<8x256xbf16>
    %cst_36 = arith.constant dense<0.000000e+00> : vector<64x256xf32>
    %59 = tpu.matmul %56, %58, %cst_36 {dimension_numbers = #tpu.dot_dimension_numbers<[1], [0], [0], [1], [0, 0, 1, 1], [], []>} : vector<64x8xbf16>, vector<8x256xbf16>, vector<64x256xf32> -> vector<64x256xf32>
    %60 = arith.addf %54, %59 : vector<64x256xf32>
    %61 = vector.shape_cast %60 : vector<64x256xf32> to vector<1x8x8x256xf32>
    %c0_37 = arith.constant 0 : index
    %c0_38 = arith.constant 0 : index
    %62 = vector.load %arg4[%c0_37, %c0_38] : memref<1x256xf32, #tpu.memory_space<vmem>>, vector<1x256xf32>
    %63 = vector.shape_cast %62 : vector<1x256xf32> to vector<1x1x1x256xf32>
    %64 = vector.broadcast %63 : vector<1x1x1x256xf32> to vector<1x8x8x256xf32>
    %65 = arith.addf %61, %64 : vector<1x8x8x256xf32>
    %c0_39 = arith.constant 0 : index
    %c0_40 = arith.constant 0 : index
    %c0_41 = arith.constant 0 : index
    %c0_42 = arith.constant 0 : index
    %66 = vector.load %arg5[%c0_39, %c0_40, %c0_41, %c0_42] : memref<1x8x8x256xf32, #tpu.memory_space<vmem>>, vector<1x8x8x256xf32>
    tpu.vector_store %arg5[%c0_39, %c0_40, %c0_41, %c0_42], %65 {strides = array<i32>} : memref<1x8x8x256xf32, #tpu.memory_space<vmem>>, vector<1x8x8x256xf32>,
    return
  }
  func.func @transform_0(%arg0: i32, %arg1: i32) -> (i32, i32, i32, i32) {
    %c0_i32 = arith.constant 0 : i32
    %c0_i32_0 = arith.constant 0 : i32
    %c0_i32_1 = arith.constant 0 : i32
    %c0_i32_2 = arith.constant 0 : i32
    return %arg0, %c0_i32, %c0_i32_0, %c0_i32_1 : i32, i32, i32, i32
  }
  func.func @transform_1(%arg0: i32, %arg1: i32) -> (i32, i32, i32) {
    %c0_i32 = arith.constant 0 : i32
    %c0_i32_0 = arith.constant 0 : i32
    %c0_i32_1 = arith.constant 0 : i32
    return %c0_i32, %c0_i32_0, %arg1 : i32, i32, i32
  }
  func.func @transform_2(%arg0: i32, %arg1: i32) -> (i32, i32) {
    %c0_i32 = arith.constant 0 : i32
    %c0_i32_0 = arith.constant 0 : i32
    return %c0_i32, %arg1 : i32, i32
  }
  func.func @transform_3(%arg0: i32, %arg1: i32) -> (i32, i32, i32, i32) {
    %c0_i32 = arith.constant 0 : i32
    %c0_i32_0 = arith.constant 0 : i32
    %c0_i32_1 = arith.constant 0 : i32
    return %arg0, %c0_i32, %c0_i32_0, %arg1 : i32, i32, i32, i32
  }
}

</mosaic_0001>

<bundles_post_ra>
// kernel: conv3x3.1
= control target key start
LH: loop header
LB: loop body
LE: loop exit
PB: predicated region body
PF: predicated region fallthrough
CT: control target
= control target key end

     0   :  { %8 = vsyncpa [#allocation4], 0  ;;  %s2686_s0 = inlined_call_operand.vmem [shape: f32[2,8,8,8], index: 0, kind: input, shape index: {}]   ;;  %s2687_s1 = inlined_call_operand.vmem [shape: bf16[9,8,256], index: 1, kind: input, shape index: {}]   ;;  %s2688_s2 = inlined_call_operand.vmem [shape: f32[1,256], index: 2, kind: input, shape index: {}]   ;;  %s2689_s3 = inlined_call_operand.hbm [shape: f32[2,8,8,256], index: 3, kind: output, shape index: {}]  }
   0x1   :  { %10 = vsyncpa [#allocation4 + $0x1], 0  ;;  %s1948_s12 = smov 0   ;;  %s1950_s13 = smov 0  }
   0x2   :  { %s1952_s14 = smov 0   ;;  %s1954_s15 = smov 0  }
   0x3   :  { %s1956_s16 = smov 0   ;;  %s1958_s17 = smov 0  }
   0x4 LB: > { %s1678_s18 = sadd.s32 4294967295, %s1923_s17   ;;  %s1679_s19 = sadd.s32 4294967294, %s1923_s17   ;;  %s1923_s17 = sphi %s1958_s17, %s16_s17   ;;  %s1919_s16 = sphi %s1956_s16, %s2700_s16   ;;  %s1915_s15 = sphi %s1954_s15, %s2699_s15   ;;  %s1911_s14 = sphi %s1952_s14, %s2698_s14   ;;  %s1907_s13 = sphi %s1950_s13, %s2697_s13   ;;  %s1903_s12 = sphi %s1948_s12, %s2696_s12  }
   0x5   : > { %s28_s20 = sadd.s32 1, %s1919_s16  ;;  %s115_s21 = sadd.s32 1, %s1911_s14 }
   0x6   : > { %p30_p0 = scmp.ge.s32.totalorder %s28_s20, 2  ;;  %p125_p1 = scmp.ne.s32.totalorder %s1911_s14, %s1907_s13 }
   0x7   : > { %p126_p2 = scmp.eq.s32.totalorder %s1678_s18, 1  ;;  %p131_p3 = scmp.ne.s32.totalorder %s1907_s13, %s1903_s12 }
   0x8   : > { %s2702_s20 = smov (%p30_p0, %s28_s20), 0  ;;  %p132_p5 = scmp.eq.s32.totalorder %s1679_s19, 1 }
   0x9   : > { %p1988_p4 = por %p126_p2, %p125_p1  ;;  %s110_s23 = ssub.s32 %s1919_s16, %s2702_s20 }
   0xa   : > { %p1684_p6 = scmp.ge.s32.totalorder %s1923_s17, 1  ;;  %p113_p7 = scmp.eq.s32.totalorder %s110_s23, 0 }
   0xb   : > { %p1995_p8 = por %p132_p5, %p131_p3  ;;  %p175_p9 = scmp.lt.s32.totalorder %s1923_s17, 3 }
   0xc   : > { %s2001_s25 = scalar_select %p113_p7, %s1911_s14, %s115_s21  }
   0xd   : > { %p176_p10 = pnand %p1684_p6, %p175_p9 }
   0xe   : > { %p208_p11 = scmp.lt.s32.totalorder (!%p176_p10), %s1915_s15, 1  ;;  %s1784_s10 = sshll.u32 (!%p176_p10), %s1915_s15, 7 }
   0xf   : > { %179 = sbr.rel (%p176_p10) target bundleno = 496 (0x1f0), region = 32  ;;  %s1574_s19 = scalar_lea.hbm (!%p176_p10), %s2689_s3, %s1784_s10 }
  0x10   : > { %s1577_s21 = sshll.u32 (!%p176_p10), %s1574_s19, 4  ;;  %s1865_s30 = scalar_lea.hbm (!%p176_p10), %s2689_s3, 256  ;;  %s1578_s21 = int_to_ptr.hbm [resolvable:$true] %s1577_s21 }
  0x11   : > { %s1859_s26 = sshra.s32 (!%p176_p10), %s1578_s21, 4  ;;  %s1860_s26 = int_to_ptr.hbm [resolvable:$true] %s1859_s26 }
  0x12   : > { %s1861_s27 = scalar_lea.hbm (!%p176_p10), %s1860_s26, 128  ;;  %p1866_p1 = scmp.lt.s32.totalorder (!%p176_p10), %s1860_s26, %s2689_s3 }
  0x13   : > { %p1862_p12 = scmp.ne.s32.totalorder (!%p176_p10), %s1860_s26, %s1861_s27  ;;  %p1867_p2 = scmp.lt.s32.totalorder (!%p176_p10), %s1865_s30, %s1861_s27 }
  0x14   : > { %v1697_v0 = vld [vmem:[%s2687_s1 + $0x18] sm:$0xff]  ;;  %vm230_vm0 = vcmask 60416   ;;  %vm479_vm1 = vcmask 1043456   ;;  %v1925_v5 = vmov 0   ;;  %s209_s28 = scalar_select %p208_p11, %s1915_s15, 1  ;;  %vm466_vm5 = vcmask 64512  }
  0x15   : > { %v462_v1 = vunpack.c.l.b16 %v1697_v0  ;;  %v463_v2 = vunpack.c.h.b16 %v1697_v0  ;;  %237 = vst.msk [vmem:[#allocation2 + $0x18] sm:$0xf] %vm230_vm0, %v1925_v5  ;;  %vm326_vm2 = vsmask.f32 256  ;;  %vm327_vm3 = vsmask.f32 4368  ;;  %p1863_p13 = pnand %p1862_p12, %p1988_p4  ;;  %p1868_p3 = por %p1867_p2, %p1866_p1 }
  0x16   : > { %238 = vst.msk [vmem:[#allocation2 + $0x1c] sm:$0xf] %vm230_vm0, %v1925_v5  ;;  %s1783_s29 = sshll.u32 %s209_s28, 6  ;;  %vm2055_vm4 = vmor %vm326_vm2, %vm327_vm3  ;;  %v433_v33 = vld [vmem:[%s2687_s1] sm:$0xff]  ;;  %v1715_v34 = vld [vmem:[%s2687_s1 + $0x30] sm:$0xff] }
  0x17   : > { %v464_v3 = vpack.c.b16 %v462_v1, %v462_v1  ;;  %v465_v4 = vpack.c.b16 %v463_v2, %v463_v2  ;;  %242 = vst.msk [vmem:[#allocation2 + $0x2c] sm:$0xf] %vm230_vm0, %v1925_v5  ;;  %s2021_s5 = scalar_lea.vmem %s2686_s0, %s1783_s29  ;;  %v550_v35 = vunpack.c.l.b16 %v433_v33  ;;  %v551_v36 = vunpack.c.h.b16 %v433_v33  ;;  %p1864_p0 = pneg %p1863_p13 }
  0x18   : > { %243 = vst.msk [vmem:[#allocation2 + $0x30] sm:$0xf] %vm230_vm0, %v1925_v5  ;;  %v281_v8 = vld [vmem:[%s2021_s5] sm:$0xff]  ;;  %v282_v9 = vld [vmem:[%s2021_s5 + $0x8] sm:$0xff]  ;;  %v648_v37 = vunpack.c.l.b16 %v1715_v34  ;;  %v649_v38 = vunpack.c.h.b16 %v1715_v34  ;;  %v283_v50 = vld [vmem:[%s2021_s5 + $0x10] sm:$0xff] }
  0x19   : > { %v481_v6 = vsel %vm479_vm1, %v464_v3, 0  ;;  %v484_v7 = vsel %vm479_vm1, %v465_v4, 0  ;;  %v289_v10 = vpack.c.bf16 %v281_v8, %v281_v8  ;;  %v290_v11 = vpack.c.bf16 %v282_v9, %v282_v9  ;;  %232 = vst.msk [vmem:[#allocation2 + $0x4] sm:$0xf] %vm230_vm0, %v1925_v5  ;;  %v285_v44 = vld [vmem:[%s2021_s5 + $0x20] sm:$0xff]  ;;  %v286_v48 = vld [vmem:[%s2021_s5 + $0x28] sm:$0xff]  ;;  %p1869_p5 = pnand %p1868_p3, %p1864_p0 }
  0x1a   : > { %493 = vmatpush.bf16.msra.mxu0 %v481_v6  ;;  %1785 = vmatpush.bf16.msra.mxu2 %v481_v6  ;;  %233 = vst.msk [vmem:[#allocation2 + $0x8] sm:$0xf] %vm230_vm0, %v1925_v5  ;;  %v552_v40 = vpack.c.b16 %v550_v35, %v550_v35  ;;  %v553_v41 = vpack.c.b16 %v551_v36, %v551_v36  ;;  %v284_v52 = vld [vmem:[%s2021_s5 + $0x18] sm:$0xff]  ;;  %v287_v54 = vld [vmem:[%s2021_s5 + $0x30] sm:$0xff]  ;;  %vm1072_vm6 = vsmask.f32 3328 }
  0x1b   : > { %522 = vmatpush.bf16.msra.mxu1 %v484_v7  ;;  %1786 = vmatpush.bf16.msra.mxu3 %v484_v7  ;;  %298 = vst.msk [vmem:[#allocation2 + $0x1c] sm:$0xf] %vm230_vm0, %v289_v10  ;;  %v650_v42 = vpack.c.b16 %v648_v37, %v648_v37  ;;  %v651_v43 = vpack.c.b16 %v649_v38, %v649_v38  ;;  %v288_v56 = vld [vmem:[%s2021_s5 + $0x38] sm:$0xff]  ;;  %vm1073_vm7 = vsmask.f32 7440  ;;  %s205_s5 = sand.u32 1, %s1907_s13  }
  0x1c   : > { %299 = vst.msk [vmem:[#allocation2 + $0x30] sm:$0xf] %vm230_vm0, %v290_v11  ;;  %v308_v12 = vld [vmem:[#allocation2 + $0x18] sm:$0x8]  ;;  %v567_v45 = vsel %vm479_vm1, %v552_v40, 0  ;;  %v570_v46 = vsel %vm479_vm1, %v553_v41, 0  ;;  %v293_v51 = vpack.c.bf16 %v285_v44, %v285_v44  ;;  %v294_v53 = vpack.c.bf16 %v286_v48, %v286_v48  ;;  %vm2281_vm8 = vmor %vm1072_vm6, %vm1073_vm7 }
  0x1d   : > { %234 = vst.msk [vmem:[#allocation2 + $0xc] sm:$0xf] %vm230_vm0, %v1925_v5  ;;  %v343_v14 = vshrl.u32 %v308_v12, 16  ;;  %v656_v47 = vsel %vm479_vm1, %v650_v42, 0  ;;  %v659_v49 = vsel %vm479_vm1, %v651_v43, 0  ;;  %v291_v55 = vpack.c.bf16 %v283_v50, %v283_v50  ;;  %s1685_s8 = sshll.u32 %s205_s5, 7 }
  0x1e   : > { %v310_v13 = vld [vmem:[#allocation2 + $0x2c] sm:$0x8]  ;;  %239 = vst.msk [vmem:[#allocation2 + $0x20] sm:$0xf] %vm230_vm0, %v1925_v5  ;;  %579 = vmatpush.bf16.msrb.mxu2 %v567_v45  ;;  %668 = vmatpush.bf16.msrb.mxu0 %v656_v47  ;;  %v292_v57 = vpack.c.bf16 %v284_v52, %v284_v52  ;;  %v295_v59 = vpack.c.bf16 %v287_v54, %v287_v54  ;;  %s2581_s9 = scalar_lea.vmem [#allocation3], %s1685_s8  ;;  %s1561_s23 = scalar_lea.sflag [#allocation4], %s205_s5 }
  0x1f   : > { %244 = vst.msk [vmem:[#allocation2 + $0x34] sm:$0xf] %vm230_vm0, %v1925_v5  ;;  %v356_v16 = vshrl.u32 %v310_v13, 16  ;;  %v1689_v22 = vrot.slane %v343_v14, 11  ;;  %608 = vmatpush.bf16.msrb.mxu3 %v570_v46  ;;  %697 = vmatpush.bf16.msrb.mxu1 %v659_v49  ;;  %v296_v60 = vpack.c.bf16 %v288_v56, %v288_v56  ;;  %s1575_s15 = sshll.u32 %s2581_s9, 4  ;;  %s1576_s15 = int_to_ptr.vmem [resolvable:$true] %s1575_s15 }
  0x20   : > { %247 = vst.msk [vmem:[#allocation2 + $0x40] sm:$0xf] %vm230_vm0, %v1925_v5 }
  0x21   : > { %248 = vst.msk [vmem:[#allocation2 + $0x44] sm:$0xf] %vm230_vm0, %v1925_v5  ;;  %v1690_v25 = vrot.slane %v356_v16, 11 }
  0x22   : > { %v2037_v15 = vld [vmem:[#allocation2 + $0x1c] sm:$0xf]  ;;  %249 = vst.msk [vmem:[#allocation2 + $0x48] sm:$0xf] %vm230_vm0, %v1925_v5 }
  0x23   : > { %v2041_v17 = vld [vmem:[#allocation2 + $0x30] sm:$0xf]  ;;  %v348_v18 = vshrl.u32 %v2037_v15, 16  ;;  %v351_v19 = vshll.u32 %v2037_v15, 16  ;;  %252 = vst.msk [vmem:[#allocation2 + $0x54] sm:$0xf] %vm230_vm0, %v1925_v5 }
  0x24   : > { %v361_v20 = vshrl.u32 %v2041_v17, 16  ;;  %v364_v21 = vshll.u32 %v2041_v17, 16  ;;  %253 = vst.msk [vmem:[#allocation2 + $0x58] sm:$0xf] %vm230_vm0, %v1925_v5 }
  0x25   : > { %v350_v23 = vrot.slane %v348_v18, 7  ;;  %254 = vst.msk [vmem:[#allocation2 + $0x5c] sm:$0xf] %vm230_vm0, %v1925_v5 }
  0x26   : > { %v363_v26 = vrot.slane %v361_v20, 7  ;;  %257 = vst.msk [vmem:[#allocation2 + $0x68] sm:$0xf] %vm230_vm0, %v1925_v5 }
  0x27   : > { %v353_v27 = vor.u32 %v351_v19, %v350_v23  ;;  %258 = vst.msk [vmem:[#allocation2 + $0x6c] sm:$0xf] %vm230_vm0, %v1925_v5  ;;  %v312_v58 = vld [vmem:[#allocation2 + $0x40] sm:$0x8] }
  0x28   : > { %v366_v28 = vor.u32 %v364_v21, %v363_v26  ;;  %259 = vst.msk [vmem:[#allocation2 + $0x70] sm:$0xf] %vm230_vm0, %v1925_v5  ;;  %v369_v62 = vshrl.u32 %v312_v58, 16 }
  0x29   : > { %v354_v29 = vsel %vm2055_vm4, %v1689_v22, %v353_v27  ;;  %262 = vst.msk [vmem:[#allocation2 + $0x7c] sm:$0xf] %vm230_vm0, %v1925_v5 }
  0x2a   : > { %v367_v30 = vsel %vm2055_vm4, %v1690_v25, %v366_v28  ;;  %v2071_v31 = vunpack.c.l.b16 %v354_v29  ;;  %263 = vst.msk [vmem:[#allocation2 + $0x80] sm:$0xf] %vm230_vm0, %v1925_v5  ;;  %v314_v0 = vld [vmem:[#allocation2 + $0x54] sm:$0x8]  ;;  %v1691_v4 = vrot.slane %v369_v62, 11 }
  0x2b   : > { %v2075_v32 = vunpack.c.l.b16 %v367_v30  ;;  %264 = vst.msk [vmem:[#allocation2 + $0x84] sm:$0xf] %vm230_vm0, %v1925_v5 }
  0x2c   : > { %267 = vst.msk [vmem:[#allocation2 + $0x90] sm:$0xf] %vm230_vm0, %v1925_v5 }
  0x2d   : > { %v457_v39 = vpack.c.b16 %v2075_v32, %v2071_v31  ;;  %268 = vst.msk [vmem:[#allocation2 + $0x94] sm:$0xf] %vm230_vm0, %v1925_v5  ;;  %v316_v61 = vld [vmem:[#allocation2 + $0x68] sm:$0x8] }
  0x2e   : > { %269 = vst.msk [vmem:[#allocation2 + $0x98] sm:$0xf] %vm230_vm0, %v1925_v5  ;;  %v395_v1 = vshrl.u32 %v316_v61, 16 }
  0x2f   : > { %1698 = vmatmul.msk.bf16.vlgmr.msra.gmra.mxu0 %vm466_vm5, %v457_v39  ;;  %1702 = vmatmul.msk.bf16.vlgmr.msra.gmra.mxu1 %vm466_vm5, %v457_v39  ;;  %272 = vst.msk [vmem:[#allocation2 + $0xa4] sm:$0xf] %vm230_vm0, %v1925_v5 }
  0x30   : > { %273 = vst.msk [vmem:[#allocation2 + $0xa8] sm:$0xf] %vm230_vm0, %v1925_v5  ;;  %v318_v63 = vld [vmem:[#allocation2 + $0x7c] sm:$0x8]  ;;  %v1693_v14 = vrot.slane %v395_v1, 11 }
  0x31   : > { %274 = vst.msk [vmem:[#allocation2 + $0xac] sm:$0xf] %vm230_vm0, %v1925_v5  ;;  %v408_v3 = vshrl.u32 %v318_v63, 16 }
  0x32   : > { %277 = vst.msk [vmem:[#allocation2 + $0xb8] sm:$0xf] %vm230_vm0, %v1925_v5 }
  0x33   : > { %278 = vst.msk [vmem:[#allocation2 + $0xbc] sm:$0xf] %vm230_vm0, %v1925_v5  ;;  %v320_v9 = vld [vmem:[#allocation2 + $0x90] sm:$0x8]  ;;  %v1694_v21 = vrot.slane %v408_v3, 11 }
  0x34   : > { %279 = vst.msk [vmem:[#allocation2 + $0xc0] sm:$0xf] %vm230_vm0, %v1925_v5  ;;  %v382_v5 = vshrl.u32 %v314_v0, 16  ;;  %v421_v36 = vshrl.u32 %v320_v9, 16 }
  0x35   : > { %302 = vst.msk [vmem:[#allocation2 + $0x6c] sm:$0xf] %vm230_vm0, %v293_v51 }
  0x36   : > { %303 = vst.msk [vmem:[#allocation2 + $0x80] sm:$0xf] %vm230_vm0, %v294_v53  ;;  %v322_v13 = vld [vmem:[#allocation2 + $0xa4] sm:$0x8]  ;;  %v1692_v29 = vrot.slane %v382_v5, 11  ;;  %v1695_v54 = vrot.slane %v421_v36, 11 }
  0x37   : > { %300 = vst.msk [vmem:[#allocation2 + $0x44] sm:$0xf] %vm230_vm0, %v291_v55  ;;  %v435_v41 = vshrl.u32 %v322_v13, 16 }
  0x38   : > { %301 = vst.msk [vmem:[#allocation2 + $0x58] sm:$0xf] %vm230_vm0, %v292_v57 }
  0x39   : > { %304 = vst.msk [vmem:[#allocation2 + $0x94] sm:$0xf] %vm230_vm0, %v295_v59  ;;  %v1696_v57 = vrot.slane %v435_v41, 11  ;;  %v1724_v59 = vld [vmem:[%s2687_s1 + $0x8] sm:$0xff] }
  0x3a   : > { %305 = vst.msk [vmem:[#allocation2 + $0xa8] sm:$0xf] %vm230_vm0, %v296_v60  ;;  %v1733_v60 = vld [vmem:[%s2687_s1 + $0x20] sm:$0xff]  ;;  %v758_v61 = vunpack.c.l.b16 %v1724_v59  ;;  %v759_v62 = vunpack.c.h.b16 %v1724_v59 }
  0x3b   : > { %v863_v63 = vunpack.c.l.b16 %v1733_v60  ;;  %v864_v0 = vunpack.c.h.b16 %v1733_v60 }
  0x3c   : > { %v2127_v2 = vld [vmem:[#allocation2 + $0x6c] sm:$0xf]  ;;  %v760_v1 = vpack.c.b16 %v758_v61, %v758_v61  ;;  %v761_v3 = vpack.c.b16 %v759_v62, %v759_v62  ;;  %v746_v61 = vunpack.c.l.b16 %v2037_v15  ;;  %v747_v62 = vunpack.c.l.b16 %v2041_v17 }
  0x3d   : > { %v2129_v6 = vld [vmem:[#allocation2 + $0x80] sm:$0xf]  ;;  %v400_v7 = vshrl.u32 %v2127_v2, 16  ;;  %v403_v8 = vshll.u32 %v2127_v2, 16  ;;  %v866_v5 = vpack.c.b16 %v864_v0, %v864_v0  ;;  %v750_v15 = vunpack.c.l.b16 %v2127_v2  ;;  %v1052_v2 = vld [vmem:[#allocation2 + $0x8] sm:$0xf] }
  0x3e   : > { %v413_v10 = vshrl.u32 %v2129_v6, 16  ;;  %v416_v11 = vshll.u32 %v2129_v6, 16  ;;  %v2135_v12 = vld [vmem:[#allocation2 + $0x44] sm:$0xf]  ;;  %v775_v9 = vsel %vm479_vm1, %v760_v1, 0  ;;  %v751_v17 = vunpack.c.l.b16 %v2129_v6 }
  0x3f   : > { %v402_v16 = vrot.slane %v400_v7, 7  ;;  %v2137_v18 = vld [vmem:[#allocation2 + $0x58] sm:$0xf]  ;;  %v374_v19 = vshrl.u32 %v2135_v12, 16  ;;  %v377_v20 = vshll.u32 %v2135_v12, 16  ;;  %v883_v13 = vsel %vm479_vm1, %v866_v5, 0 }
  0x40   : > { %v415_v22 = vrot.slane %v413_v10, 7  ;;  %v387_v23 = vshrl.u32 %v2137_v18, 16  ;;  %v390_v25 = vshll.u32 %v2137_v18, 16  ;;  %v2143_v26 = vld [vmem:[#allocation2 + $0x94] sm:$0xf]  ;;  %v778_v10 = vsel %vm479_vm1, %v761_v3, 0  ;;  %921 = vmatpush.bf16.msra.mxu1 %v883_v13 }
  0x41   : > { %v405_v27 = vor.u32 %v403_v8, %v402_v16  ;;  %v376_v28 = vrot.slane %v374_v19, 7  ;;  %v2145_v30 = vld [vmem:[#allocation2 + $0xa8] sm:$0xf]  ;;  %v426_v33 = vshrl.u32 %v2143_v26, 16  ;;  %v429_v40 = vshll.u32 %v2143_v26, 16 }
  0x42   : > { %v418_v34 = vor.u32 %v416_v11, %v415_v22  ;;  %v389_v35 = vrot.slane %v387_v23, 7  ;;  %v440_v37 = vshrl.u32 %v2145_v30, 16  ;;  %v443_v45 = vshll.u32 %v2145_v30, 16 }
  0x43   : > { %v406_v38 = vsel %vm2055_vm4, %v1693_v14, %v405_v27  ;;  %v379_v39 = vor.u32 %v377_v20, %v376_v28  ;;  %v428_v48 = vrot.slane %v426_v33, 7  ;;  %v2180_v14 = vld [vmem:[#allocation2 + $0x8] sm:$0xf]  ;;  %v748_v1 = vunpack.c.l.b16 %v2135_v12 }
  0x44   : > { %v419_v42 = vsel %vm2055_vm4, %v1694_v21, %v418_v34  ;;  %v453_v43 = vunpack.c.l.b16 %v406_v38  ;;  %v392_v44 = vor.u32 %v390_v25, %v389_v35  ;;  %v442_v49 = vrot.slane %v440_v37, 7  ;;  %v306_v21 = vld [vmem:[#allocation2 + $0x4] sm:$0x8] }
  0x45   : > { %v2155_v46 = vunpack.c.l.b16 %v419_v42  ;;  %v380_v47 = vsel %vm2055_vm4, %v1691_v4, %v379_v39  ;;  %v431_v56 = vor.u32 %v429_v40, %v428_v48  ;;  %v865_v4 = vpack.c.b16 %v863_v63, %v863_v63  ;;  %v324_v39 = vld [vmem:[#allocation2 + $0xb8] sm:$0x8] }
  0x46   : > { %v393_v50 = vsel %vm2055_vm4, %v1692_v29, %v392_v44  ;;  %v451_v51 = vunpack.c.l.b16 %v380_v47  ;;  %v445_v58 = vor.u32 %v443_v45, %v442_v49  ;;  %v335_v20 = vshrl.u32 %v2180_v14, 16  ;;  %v1751_v49 = vld [vmem:[%s2687_s1 + $0x10] sm:$0xff] }
  0x47   : > { %v459_v52 = vpack.c.b16 %v2155_v46, %v453_v43  ;;  %v452_v53 = vunpack.c.l.b16 %v393_v50  ;;  %v432_v7 = vsel %vm2055_vm4, %v1695_v54, %v431_v56  ;;  %v880_v11 = vsel %vm479_vm1, %v865_v4, 0 }
  0x48   : > { %v446_v8 = vsel %vm2055_vm4, %v1696_v57, %v445_v58  ;;  %892 = vmatpush.bf16.msra.mxu0 %v880_v11  ;;  %v455_v16 = vunpack.c.l.b16 %v432_v7  ;;  %v330_v23 = vshrl.u32 %v306_v21, 16  ;;  %v337_v25 = vrot.slane %v335_v20, 7 }
  0x49   : > { %1700 = vmatmul.msk.bf16.vlgmr.msra.gmra.mxu2 %vm466_vm5, %v459_v52  ;;  %1704 = vmatmul.msk.bf16.vlgmr.msra.gmra.mxu3 %vm466_vm5, %v459_v52  ;;  %v458_v55 = vpack.c.b16 %v452_v53, %v451_v51  ;;  %v456_v19 = vunpack.c.l.b16 %v446_v8  ;;  %v338_v27 = vshll.u32 %v2180_v14, 16  ;;  %v546_v28 = vpack.c.b16 %v451_v51, %v2075_v32  ;;  %v2196_v32 = vld [vmem:[#allocation2 + $0xbc] sm:$0xf] }
  0x4a   : > { %787 = vmatpush.bf16.msra.mxu2 %v775_v9  ;;  %816 = vmatpush.bf16.msra.mxu3 %v778_v10  ;;  %v1688_v29 = vrot.slane %v330_v23, 11  ;;  %v547_v37 = vpack.c.b16 %v453_v43, %v452_v53  ;;  %v636_v38 = vshrl.u32 %v2196_v32, 16  ;;  %v548_v40 = vpack.c.b16 %v455_v16, %v2155_v46  ;;  %v1742_v46 = vld [vmem:[%s2687_s1 + $0x38] sm:$0xff] }
  0x4b   : > { %1699 = vmatmul.msk.bf16.gmra.mxu0 %vm466_vm5, %v458_v55  ;;  %1703 = vmatmul.msk.bf16.gmra.mxu1 %vm466_vm5, %v458_v55  ;;  %v460_v22 = vpack.c.b16 %v456_v19, %v455_v16  ;;  %v340_v33 = vor.u32 %v338_v27, %v337_v25  ;;  %v631_v41 = vshrl.u32 %v324_v39, 16  ;;  %v965_v50 = vunpack.c.l.b16 %v1742_v46  ;;  %v1054_v9 = vld [vmem:[#allocation2 + $0x1c] sm:$0xf]  ;;  %v1053_v25 = vld [vmem:[#allocation2 + $0xc] sm:$0x1] }
  0x4c   : > { %v638_v42 = vrot.slane %v636_v38, 7  ;;  %v966_v51 = vunpack.c.h.b16 %v1742_v46  ;;  %v1202_v52 = vunpack.c.l.b16 %v1751_v49  ;;  %v1203_v53 = vunpack.c.h.b16 %v1751_v49 }
  0x4d   : > { %v341_v34 = vsel %vm2055_vm4, %v1688_v29, %v340_v33  ;;  %v1714_v43 = vrot.slane %v631_v41, 11  ;;  %v967_v24 = vpack.c.b16 %v965_v50, %v965_v50  ;;  %v858_v63 = vpack.c.b16 %v747_v62, %v746_v61  ;;  %v1055_v33 = vld [vmem:[#allocation2 + $0x20] sm:$0x1]  ;;  %v1760_v41 = vld [vmem:[%s2687_s1 + $0x28] sm:$0xff] }
  0x4e   : > { %v544_v35 = vunpack.c.l.b16 %v341_v34  ;;  %v968_v54 = vpack.c.b16 %v966_v51, %v966_v51  ;;  %v1204_v55 = vpack.c.b16 %v1202_v52, %v1202_v52  ;;  %v1205_v56 = vpack.c.b16 %v1203_v53, %v1203_v53 }
  0x4f   : > { %v973_v57 = vsel %vm479_vm1, %v967_v24, 0  ;;  %v745_v0 = vunpack.c.l.b16 %v2180_v14  ;;  %v749_v3 = vunpack.c.l.b16 %v2137_v18  ;;  %v2240_v12 = vpack.c.b16 %v748_v1, %v747_v62  ;;  %v1769_v24 = vld [vmem:[%s2687_s1 + $0x40] sm:$0xff] }
  0x50   : > { %v545_v36 = vpack.c.b16 %v2071_v31, %v544_v35  ;;  %v639_v31 = vshll.u32 %v2196_v32, 16  ;;  %v976_v58 = vsel %vm479_vm1, %v968_v54, 0  ;;  %v1219_v59 = vsel %vm479_vm1, %v1204_v55, 0 }
  0x51   : > { %v1222_v60 = vsel %vm479_vm1, %v1205_v56, 0  ;;  %v753_v4 = vpack.c.b16 %v746_v61, %v745_v0  ;;  %v859_v5 = vpack.c.b16 %v749_v3, %v748_v1  ;;  %v860_v18 = vpack.c.b16 %v751_v17, %v750_v15 }
  0x52   : > { %v641_v44 = vor.u32 %v639_v31, %v638_v42  ;;  %v1076_v13 = vshrl.u32 %v1052_v2, 16  ;;  %v1079_v14 = vshll.u32 %v1052_v2, 16  ;;  %v1090_v16 = vshrl.u32 %v1054_v9, 16 }
  0x53   : > { %v752_v20 = vunpack.c.l.b16 %v2143_v26  ;;  %v857_v21 = vunpack.c.l.b16 %v2145_v30  ;;  %v2256_v29 = vpack.c.b16 %v750_v15, %v749_v3  ;;  %v1320_v42 = vunpack.c.l.b16 %v1760_v41 }
  0x54   : > { %v642_v45 = vsel %vm2055_vm4, %v1714_v43, %v641_v44  ;;  %v1081_v23 = vrot.slane %v1079_v14, 5  ;;  %v1092_v27 = vrot.slane %v1090_v16, 4  ;;  %v1321_v31 = vunpack.c.h.b16 %v1760_v41 }
  0x55   : > { %v645_v47 = vunpack.c.l.b16 %v642_v45  ;;  %v861_v34 = vpack.c.b16 %v857_v21, %v752_v20  ;;  %v1056_v45 = vld [vmem:[#allocation2 + $0x30] sm:$0xf]  ;;  %v1322_v51 = vpack.c.b16 %v1320_v42, %v1320_v42  ;;  %v1436_v61 = vunpack.c.h.b16 %v1769_v24 }
  0x56   : > { %v1323_v52 = vpack.c.b16 %v1321_v31, %v1321_v31  ;;  %v1104_v54 = vshrl.u32 %v1056_v45, 16  ;;  %v1107_v55 = vshll.u32 %v1056_v45, 16  ;;  %v1060_v31 = vld [vmem:[#allocation2 + $0x58] sm:$0xf] }
  0x57   : > { %v646_v48 = vpack.c.b16 %v645_v47, %v456_v19  ;;  %v1093_v19 = vshll.u32 %v1054_v9, 16  ;;  %v1058_v47 = vld [vmem:[#allocation2 + $0x44] sm:$0xf] }
  0x58   : > { %v1118_v56 = vshrl.u32 %v1058_v47, 16  ;;  %v1109_v15 = vrot.slane %v1107_v55, 5 }
  0x59   : > { %1701 = vmatmul.msk.bf16.gmra.mxu2 %vm466_vm5, %v460_v22  ;;  %1705 = vmatmul.msk.bf16.gmra.mxu3 %vm466_vm5, %v460_v22  ;;  %v1078_v22 = vrot.slane %v1076_v13, 4 }
  0x5a   : > { %v1120_v9 = vrot.slane %v1118_v56, 4 }
  0x5b   : > { %1716 = vmatmul.msk.bf16.vlgmr.msrb.gmra.mxu0 %vm466_vm5, %v546_v28  ;;  %1720 = vmatmul.msk.bf16.vlgmr.msrb.gmra.mxu1 %vm466_vm5, %v546_v28  ;;  %v1082_v35 = vor.u32 %v1081_v23, %v1078_v22  ;;  %v1059_v22 = vld [vmem:[#allocation2 + $0x48] sm:$0x1] }
  0x5c   : > { %1231 = vmatpush.bf16.msrb.mxu0 %v1219_v59  ;;  %1260 = vmatpush.bf16.msrb.mxu1 %v1222_v60  ;;  %v1340_v59 = vsel %vm479_vm1, %v1323_v52, 0  ;;  %v1435_v60 = vunpack.c.l.b16 %v1769_v24 }
  0x5d   : > { %v1083_v43 = vrot.slane %v1082_v35, 4  ;;  %v1127_v35 = vshll.u32 %v1059_v22, 16 }
  0x5e   : > { %v1437_v3 = vpack.c.b16 %v1435_v60, %v1435_v60 }
  0x5f   : > { %v1129_v26 = vrot.slane %v1127_v35, 5 }
  0x69   : > { %1706 = vmatmul.msk.bf16.vlgmr.msrb.gmra.mxu2 %vm466_vm5, %v545_v36  ;;  %1710 = vmatmul.msk.bf16.vlgmr.msrb.gmra.mxu3 %vm466_vm5, %v545_v36  ;;  %v1085_v36 = vshll.u32 %v1053_v25, 16 }
  0x6a   : > { %985 = vmatpush.bf16.msrb.mxu2 %v973_v57  ;;  %1014 = vmatpush.bf16.msrb.mxu3 %v976_v58  ;;  %v1121_v57 = vshll.u32 %v1058_v47, 16  ;;  %v1337_v58 = vsel %vm479_vm1, %v1322_v51, 0  ;;  %v1132_v47 = vshrl.u32 %v1060_v31, 16 }
  0x6b   : > { %1717 = vmatmul.msk.bf16.gmra.mxu0 %vm466_vm5, %v547_v37  ;;  %1721 = vmatmul.msk.bf16.gmra.mxu1 %vm466_vm5, %v547_v37  ;;  %v1087_v44 = vrot.slane %v1085_v36, 5 }
  0x6c   : > { %v1123_v13 = vrot.slane %v1121_v57, 5  ;;  %v1134_v56 = vrot.slane %v1132_v47, 4 }
  0x6d   : > { %v1088_v0 = vsel %vm2281_vm8, %v1083_v43, %v1087_v44  ;;  %v1062_v43 = vld [vmem:[#allocation2 + $0x6c] sm:$0xf] }
  0x6e   : > { %v1189_v14 = vunpack.c.l.b16 %v1088_v0  ;;  %v1149_v51 = vshll.u32 %v1062_v43, 16  ;;  %v1061_v0 = vld [vmem:[#allocation2 + $0x5c] sm:$0x1] }
  0x79   : > { %1707 = vmatmul.msk.bf16.gmra.mxu2 %vm466_vm5, %v546_v28  ;;  %1711 = vmatmul.msk.bf16.gmra.mxu3 %vm466_vm5, %v546_v28  ;;  %v1095_v28 = vrot.slane %v1093_v19, 5  ;;  %v1057_v19 = vld [vmem:[#allocation2 + $0x34] sm:$0x1] }
  0x7b   : > { %1718 = vmatmul.msk.bf16.gmra.mxu0 %vm466_vm5, %v548_v40  ;;  %1722 = vmatmul.msk.bf16.gmra.mxu1 %vm466_vm5, %v548_v40  ;;  %v1096_v39 = vor.u32 %v1095_v28, %v1092_v27  ;;  %v2310_v27 = vpack.c.b16 %v752_v20, %v751_v17 }
  0x7d   : > { %v1097_v49 = vrot.slane %v1096_v39, 4 }
  0x89   : > { %1708 = vmatmul.msk.bf16.gmra.mxu2 %vm466_vm5, %v547_v37  ;;  %1712 = vmatmul.msk.bf16.gmra.mxu3 %vm466_vm5, %v547_v37 }
  0x8b   : > { %1719 = vmatmul.msk.bf16.gmra.mxu0 %vm466_vm5, %v646_v48  ;;  %1723 = vmatmul.msk.bf16.gmra.mxu1 %vm466_vm5, %v646_v48 }
  0x99   : > { %1709 = vmatmul.msk.bf16.gmra.mxu2 %vm466_vm5, %v548_v40  ;;  %1713 = vmatmul.msk.bf16.gmra.mxu3 %vm466_vm5, %v548_v40  ;;  %v1099_v40 = vshll.u32 %v1055_v33, 16  ;;  %v1113_v33 = vshll.u32 %v1057_v19, 16 }
  0x9b   : > { %1734 = vmatmul.msk.bf16.vlgmr.msra.gmra.mxu0 %vm466_vm5, %v858_v63  ;;  %1738 = vmatmul.msk.bf16.vlgmr.msra.gmra.mxu1 %vm466_vm5, %v858_v63  ;;  %v1101_v50 = vrot.slane %v1099_v40, 5  ;;  %v1115_v6 = vrot.slane %v1113_v33, 5 }
  0x9d   : > { %v1102_v1 = vsel %vm2281_vm8, %v1097_v49, %v1101_v50  ;;  %v1135_v49 = vshll.u32 %v1060_v31, 16  ;;  %v1146_v50 = vshrl.u32 %v1062_v43, 16 }
  0x9e   : > { %v2300_v16 = vunpack.c.l.b16 %v1102_v1  ;;  %v1063_v1 = vld [vmem:[#allocation2 + $0x70] sm:$0x1] }
  0x9f   : > { %v1137_v57 = vrot.slane %v1135_v49, 5 }
  0xa0   : > { %v1197_v36 = vpack.c.b16 %v2300_v16, %v1189_v14 }
  0xa9   : > { %1725 = vmatmul.msk.bf16.vlgmr.msra.gmra.mxu2 %vm466_vm5, %v753_v4  ;;  %1729 = vmatmul.msk.bf16.vlgmr.msra.gmra.mxu3 %vm466_vm5, %v753_v4  ;;  %v1438_v4 = vpack.c.b16 %v1436_v61, %v1436_v61 }
  0xaa   : > { %1349 = vmatpush.bf16.msra.mxu2 %v1337_v58  ;;  %1378 = vmatpush.bf16.msra.mxu3 %v1340_v59  ;;  %v1148_v58 = vrot.slane %v1146_v50, 4  ;;  %v1151_v59 = vrot.slane %v1149_v51, 5 }
  0xab   : > { %1735 = vmatmul.msk.bf16.gmra.mxu0 %vm466_vm5, %v859_v5  ;;  %1739 = vmatmul.msk.bf16.gmra.mxu1 %vm466_vm5, %v859_v5  ;;  %v1106_v5 = vrot.slane %v1104_v54, 4  ;;  %v1446_v2 = vsel %vm479_vm1, %v1438_v4, 0  ;;  %v1138_v4 = vor.u32 %v1137_v57, %v1134_v56 }
  0xac   : > { %v2236_v7 = vpop.f32.mrf.mxu0  ;;  %v2238_v8 = vpop.f32.mrf.mxu1  ;;  %1484 = vmatpush.bf16.msra.mxu1 %v1446_v2 }
  0xad   : > { %v1110_v28 = vor.u32 %v1109_v15, %v1106_v5  ;;  %v1141_v5 = vshll.u32 %v1061_v0, 16  ;;  %v1152_v15 = vor.u32 %v1151_v59, %v1148_v58  ;;  %v1065_v0 = vld [vmem:[#allocation2 + $0x84] sm:$0x1] }
  0xaf   : > { %v1111_v41 = vrot.slane %v1110_v28, 4  ;;  %v1143_v14 = vrot.slane %v1141_v5, 5  ;;  %v1153_v19 = vrot.slane %v1152_v15, 4 }
  0xb1   : > { %v1116_v44 = vsel %vm2281_vm8, %v1111_v41, %v1115_v6  ;;  %v1066_v41 = vld [vmem:[#allocation2 + $0x94] sm:$0xf] }
  0xb2   : > { %v2327_v54 = vunpack.c.l.b16 %v1116_v44  ;;  %v1174_v47 = vshrl.u32 %v1066_v41, 16 }
  0xb4   : > { %v2250_v10 = vpop.f32.mrf.mxu0  ;;  %v2252_v11 = vpop.f32.mrf.mxu1  ;;  %v1176_v58 = vrot.slane %v1174_v47, 4 }
  0xb9   : > { %1726 = vmatmul.msk.bf16.gmra.mxu2 %vm466_vm5, %v2240_v12  ;;  %1730 = vmatmul.msk.bf16.gmra.mxu3 %vm466_vm5, %v2240_v12 }
  0xbb   : > { %1736 = vmatmul.msk.bf16.gmra.mxu0 %vm466_vm5, %v860_v18  ;;  %1740 = vmatmul.msk.bf16.gmra.mxu1 %vm466_vm5, %v860_v18  ;;  %v1443_v18 = vsel %vm479_vm1, %v1437_v3, 0 }
  0xbc   : > { %1455 = vmatpush.bf16.msra.mxu0 %v1443_v18  ;;  %v1155_v18 = vshll.u32 %v1063_v1, 16  ;;  %v1067_v1 = vld [vmem:[#allocation2 + $0x98] sm:$0x1] }
  0xbe   : > { %v1157_v22 = vrot.slane %v1155_v18, 5 }
  0xc0   : > { %v1158_v6 = vsel %vm2281_vm8, %v1153_v19, %v1157_v22  ;;  %v1169_v19 = vshll.u32 %v1065_v0, 16 }
  0xc8   : > { %v2262_v37 = vpop.f32.mrf.mxu0  ;;  %v2264_v38 = vpop.f32.mrf.mxu1 }
  0xc9   : > { %1727 = vmatmul.msk.bf16.gmra.mxu2 %vm466_vm5, %v2256_v29  ;;  %1731 = vmatmul.msk.bf16.gmra.mxu3 %vm466_vm5, %v2256_v29 }
  0xcb   : > { %1737 = vmatmul.msk.bf16.gmra.mxu0 %vm466_vm5, %v861_v34  ;;  %1741 = vmatmul.msk.bf16.gmra.mxu1 %vm466_vm5, %v861_v34  ;;  %v1124_v34 = vor.u32 %v1123_v13, %v1120_v9  ;;  %v1139_v13 = vrot.slane %v1138_v4, 4 }
  0xcc   : > { %v2275_v48 = vpop.f32.mrf.mxu2  ;;  %v2277_v46 = vpop.f32.mrf.mxu3 }
  0xcd   : > { %v1125_v42 = vrot.slane %v1124_v34, 4 }
  0xcf   : > { %v1130_v45 = vsel %vm2281_vm8, %v1125_v42, %v1129_v26 }
  0xd0   : > { %v2290_v62 = vpop.f32.mrf.mxu0  ;;  %v2292_v63 = vpop.f32.mrf.mxu1  ;;  %v2329_v55 = vunpack.c.l.b16 %v1130_v45 }
  0xd2   : > { %v2337_v3 = vpack.c.b16 %v2329_v55, %v2327_v54 }
  0xd4   : > { %v2302_v23 = vpop.f32.mrf.mxu2  ;;  %v2304_v25 = vpop.f32.mrf.mxu3 }
  0xd8   : > { %v670_v39 = vpop.f32.mrf.mxu0  ;;  %v699_v40 = vpop.f32.mrf.mxu1 }
  0xd9   : > { %1728 = vmatmul.msk.bf16.gmra.mxu2 %vm466_vm5, %v2310_v27  ;;  %1732 = vmatmul.msk.bf16.gmra.mxu3 %vm466_vm5, %v2310_v27 }
  0xdb   : > { %1752 = vmatmul.msk.bf16.vlgmr.msrb.gmra.mxu0 %vm466_vm5, %v1197_v36  ;;  %1756 = vmatmul.msk.bf16.vlgmr.msrb.gmra.mxu1 %vm466_vm5, %v1197_v36  ;;  %v1064_v36 = vld [vmem:[#allocation2 + $0x80] sm:$0xf] }
  0xdc   : > { %v2319_v17 = vpop.f32.mrf.mxu2  ;;  %v2321_v20 = vpop.f32.mrf.mxu3  ;;  %v1160_v44 = vshrl.u32 %v1064_v36, 16  ;;  %v1163_v45 = vshll.u32 %v1064_v36, 16 }
  0xde   : > { %v1162_v56 = vrot.slane %v1160_v44, 4  ;;  %v1165_v57 = vrot.slane %v1163_v45, 5 }
  0xe0   : > { %v672_v52 = vpop.f32.mrf.mxu0  ;;  %v701_v24 = vpop.f32.mrf.mxu1 }
  0xe4   : > { %v2331_v60 = vpop.f32.mrf.mxu2  ;;  %v2333_v61 = vpop.f32.mrf.mxu3 }
  0xe8   : > { %v675_v2 = vpop.f32.mrf.mxu0  ;;  %v704_v9 = vpop.f32.mrf.mxu1 }
  0xe9   : > { %1743 = vmatmul.msk.bf16.vlgmr.msrb.gmra.mxu2 %vm466_vm5, %v2240_v12  ;;  %1747 = vmatmul.msk.bf16.vlgmr.msrb.gmra.mxu3 %vm466_vm5, %v2240_v12  ;;  %v1144_v12 = vsel %vm2281_vm8, %v1139_v13, %v1143_v14  ;;  %v1166_v14 = vor.u32 %v1165_v57, %v1162_v56 }
  0xea   : > { %v2357_v49 = vunpack.c.l.b16 %v1144_v12 }
  0xeb   : > { %1753 = vmatmul.msk.bf16.gmra.mxu0 %vm466_vm5, %v2337_v3  ;;  %1757 = vmatmul.msk.bf16.gmra.mxu1 %vm466_vm5, %v2337_v3 }
  0xec   : > { %v581_v28 = vpop.f32.mrf.mxu2  ;;  %v610_v33 = vpop.f32.mrf.mxu3 }
  0xed   : > { %v582_v34 = vadd.f32 %v581_v28, %v2236_v7  ;;  %v611_v35 = vadd.f32 %v610_v33, %v2238_v8  ;;  %v1177_v7 = vshll.u32 %v1066_v41, 16  ;;  %v2359_v8 = vunpack.c.l.b16 %v1158_v6 }
  0xee   : > { %v1183_v28 = vshll.u32 %v1067_v1, 16 }
  0xef   : > { %v2353_v42 = vadd.f32 %v670_v39, %v582_v34  ;;  %v2355_v26 = vadd.f32 %v699_v40, %v611_v35  ;;  %v1179_v59 = vrot.slane %v1177_v7, 5  ;;  %v2365_v4 = vpack.c.b16 %v2359_v8, %v2357_v49 }
  0xf0   : > { %v677_v31 = vpop.f32.mrf.mxu0  ;;  %v706_v43 = vpop.f32.mrf.mxu1  ;;  %v1185_v34 = vrot.slane %v1183_v28, 5 }
  0xf1   : > { %v1180_v22 = vor.u32 %v1179_v59, %v1176_v58 }
  0xf3   : > { %v1181_v33 = vrot.slane %v1180_v22, 4 }
  0xf4   : > { %v583_v50 = vpop.f32.mrf.mxu2  ;;  %v612_v51 = vpop.f32.mrf.mxu3 }
  0xf5   : > { %v584_v39 = vadd.f32 %v583_v50, %v2250_v10  ;;  %v613_v40 = vadd.f32 %v612_v51, %v2252_v11  ;;  %v1186_v45 = vsel %vm2281_vm8, %v1181_v33, %v1185_v34  ;;  %v1315_v34 = vpack.c.b16 %v2327_v54, %v2300_v16 }
  0xf6   : > { %v2391_v7 = vunpack.c.l.b16 %v1186_v45 }
  0xf7   : > { %v2367_v5 = vadd.f32 %v672_v52, %v584_v39  ;;  %v2369_v15 = vadd.f32 %v701_v24, %v613_v40  ;;  %v1167_v52 = vrot.slane %v1166_v14, 4  ;;  %v1171_v24 = vrot.slane %v1169_v19, 5 }
  0xf8   : > { %v680_v18 = vpop.f32.mrf.mxu0  ;;  %v709_v13 = vpop.f32.mrf.mxu1 }
  0xf9   : > { %1744 = vmatmul.msk.bf16.gmra.mxu2 %vm466_vm5, %v2256_v29  ;;  %1748 = vmatmul.msk.bf16.gmra.mxu3 %vm466_vm5, %v2256_v29  ;;  %v1172_v44 = vsel %vm2281_vm8, %v1167_v52, %v1171_v24 }
  0xfa   : > { %v2389_v47 = vunpack.c.l.b16 %v1172_v44  ;;  %v1070_v44 = vld [vmem:[#allocation2 + $0xbc] sm:$0xf] }
  0xfb   : > { %1754 = vmatmul.msk.bf16.gmra.mxu0 %vm466_vm5, %v2365_v4  ;;  %1758 = vmatmul.msk.bf16.gmra.mxu1 %vm466_vm5, %v2365_v4 }
  0xfc   : > { %v586_v10 = vpop.f32.mrf.mxu2  ;;  %v615_v11 = vpop.f32.mrf.mxu3 }
  0xfd   : > { %v587_v35 = vadd.f32 %v586_v10, %v2262_v37  ;;  %v616_v36 = vadd.f32 %v615_v11, %v2264_v38 }
  0xff   : > { %v2381_v41 = vadd.f32 %v675_v2, %v587_v35  ;;  %v2383_v12 = vadd.f32 %v704_v9, %v616_v36  ;;  %v2397_v9 = vpack.c.b16 %v2391_v7, %v2389_v47 }
 0x100   : > { %v682_v29 = vpop.f32.mrf.mxu0  ;;  %v711_v6 = vpop.f32.mrf.mxu1 }
 0x104   : > { %v588_v50 = vpop.f32.mrf.mxu2  ;;  %v617_v37 = vpop.f32.mrf.mxu3 }
 0x105   : > { %v589_v38 = vadd.f32 %v588_v50, %v2290_v62  ;;  %v618_v2 = vadd.f32 %v617_v37, %v2292_v63 }
 0x107   : > { %v2399_v51 = vadd.f32 %v677_v31, %v589_v38  ;;  %v2401_v56 = vadd.f32 %v706_v43, %v618_v2 }
 0x108   : > { %v685_v57 = vpop.f32.mrf.mxu0  ;;  %v714_v58 = vpop.f32.mrf.mxu1 }
 0x109   : > { %1745 = vmatmul.msk.bf16.gmra.mxu2 %vm466_vm5, %v2310_v27  ;;  %1749 = vmatmul.msk.bf16.gmra.mxu3 %vm466_vm5, %v2310_v27  ;;  %v962_v27 = vunpack.c.l.b16 %v2196_v32 }
 0x10b   : > { %1755 = vmatmul.msk.bf16.gmra.mxu0 %vm466_vm5, %v2397_v9  ;;  %1759 = vmatmul.msk.bf16.gmra.mxu1 %vm466_vm5, %v2397_v9  ;;  %v963_v28 = vpack.c.b16 %v962_v27, %v857_v21  ;;  %v1316_v27 = vpack.c.b16 %v2357_v49, %v2329_v55 }
 0x10c   : > { %v591_v62 = vpop.f32.mrf.mxu2  ;;  %v620_v63 = vpop.f32.mrf.mxu3 }
 0x10d   : > { %v592_v31 = vadd.f32 %v591_v62, %v2275_v48  ;;  %v621_v43 = vadd.f32 %v620_v63, %v2277_v46  ;;  %v1420_v62 = vshll.u32 %v1070_v44, 16 }
 0x10f   : > { %v2413_v59 = vadd.f32 %v680_v18, %v592_v31  ;;  %v2415_v39 = vadd.f32 %v709_v13, %v621_v43 }
 0x110   : > { %v687_v40 = vpop.f32.mrf.mxu0  ;;  %v716_v0 = vpop.f32.mrf.mxu1 }
 0x114   : > { %v593_v1 = vpop.f32.mrf.mxu2  ;;  %v622_v14 = vpop.f32.mrf.mxu3 }
 0x115   : > { %v594_v19 = vadd.f32 %v593_v1, %v2302_v23  ;;  %v623_v22 = vadd.f32 %v622_v14, %v2304_v25  ;;  %v1069_v1 = vld [vmem:[#allocation2 + $0xac] sm:$0x1]  ;;  %v1071_v14 = vld [vmem:[#allocation2 + $0xc0] sm:$0x1] }
 0x117   : > { %v2422_v48 = vadd.f32 %v682_v29, %v594_v19  ;;  %v2424_v46 = vadd.f32 %v711_v6, %v623_v22  ;;  %v1068_v6 = vld [vmem:[#allocation2 + $0xa8] sm:$0xf] }
 0x118   : > { %v894_v18 = vpop.f32.mrf.mxu0  ;;  %v923_v13 = vpop.f32.mrf.mxu1  ;;  %v1299_v2 = vshrl.u32 %v1068_v6, 16 }
 0x119   : > { %1746 = vmatmul.msk.bf16.gmra.mxu2 %vm466_vm5, %v963_v28  ;;  %1750 = vmatmul.msk.bf16.gmra.mxu3 %vm466_vm5, %v963_v28 }
 0x11a   : > { %v1301_v31 = vrot.slane %v1299_v2, 4 }
 0x11b   : > { %1770 = vmatmul.msk.bf16.vlgmr.msra.gmra.mxu0 %vm466_vm5, %v2337_v3  ;;  %1774 = vmatmul.msk.bf16.vlgmr.msra.gmra.mxu1 %vm466_vm5, %v2337_v3 }
 0x11c   : > { %v596_v32 = vpop.f32.mrf.mxu2  ;;  %v625_v23 = vpop.f32.mrf.mxu3 }
 0x11d   : > { %v597_v30 = vadd.f32 %v596_v32, %v2319_v17  ;;  %v626_v21 = vadd.f32 %v625_v23, %v2321_v20  ;;  %v1308_v32 = vshll.u32 %v1069_v1, 16 }
 0x11f   : > { %v2434_v25 = vadd.f32 %v685_v57, %v597_v30  ;;  %v2436_v10 = vadd.f32 %v714_v58, %v626_v21  ;;  %v1302_v57 = vshll.u32 %v1068_v6, 16  ;;  %v1417_v58 = vshrl.u32 %v1070_v44, 16 }
 0x120   : > { %v896_v11 = vpop.f32.mrf.mxu0  ;;  %v925_v52 = vpop.f32.mrf.mxu1  ;;  %v1426_v30 = vshll.u32 %v1071_v14, 16 }
 0x121   : > { %v1304_v43 = vrot.slane %v1302_v57, 5 }
 0x124   : > { %v598_v24 = vpop.f32.mrf.mxu2  ;;  %v627_v33 = vpop.f32.mrf.mxu3 }
 0x125   : > { %v599_v35 = vadd.f32 %v598_v24, %v2331_v60  ;;  %v628_v3 = vadd.f32 %v627_v33, %v2333_v61 }
 0x127   : > { %v2442_v36 = vadd.f32 %v687_v40, %v599_v35  ;;  %v2444_v17 = vadd.f32 %v716_v0, %v628_v3  ;;  %v1419_v40 = vrot.slane %v1417_v58, 4 }
 0x128   : > { %v899_v20 = vpop.f32.mrf.mxu0  ;;  %v928_v29 = vpop.f32.mrf.mxu1 }
 0x129   : > { %1761 = vmatmul.msk.bf16.vlgmr.msra.gmra.mxu2 %vm466_vm5, %v1315_v34  ;;  %1765 = vmatmul.msk.bf16.vlgmr.msra.gmra.mxu3 %vm466_vm5, %v1315_v34 }
 0x12b   : > { %1771 = vmatmul.msk.bf16.gmra.mxu0 %vm466_vm5, %v2365_v4  ;;  %1775 = vmatmul.msk.bf16.gmra.mxu1 %vm466_vm5, %v2365_v4 }
 0x12c   : > { %v789_v16 = vpop.f32.mrf.mxu2  ;;  %v818_v54 = vpop.f32.mrf.mxu3 }
 0x12d   : > { %v838_v60 = vadd.f32 %v789_v16, %v2353_v42  ;;  %v839_v61 = vadd.f32 %v818_v54, %v2355_v26  ;;  %v1422_v42 = vrot.slane %v1420_v62, 5 }
 0x12f   : > { %v2454_v45 = vadd.f32 %v894_v18, %v838_v60  ;;  %v2456_v50 = vadd.f32 %v923_v13, %v839_v61  ;;  %v1305_v13 = vor.u32 %v1304_v43, %v1301_v31  ;;  %v1423_v23 = vor.u32 %v1422_v42, %v1419_v40 }
 0x130   : > { %v901_v37 = vpop.f32.mrf.mxu0  ;;  %v930_v38 = vpop.f32.mrf.mxu1 }
 0x131   : > { %v1424_v21 = vrot.slane %v1423_v23, 4 }
 0x134   : > { %v791_v63 = vpop.f32.mrf.mxu2  ;;  %v820_v4 = vpop.f32.mrf.mxu3 }
 0x135   : > { %v840_v26 = vadd.f32 %v791_v63, %v2367_v5  ;;  %v841_v0 = vadd.f32 %v820_v4, %v2369_v15  ;;  %v1306_v5 = vrot.slane %v1305_v13, 4  ;;  %v1310_v15 = vrot.slane %v1308_v32, 5 }
 0x137   : > { %v2462_v19 = vadd.f32 %v896_v11, %v840_v26  ;;  %v2464_v22 = vadd.f32 %v925_v52, %v841_v0  ;;  %v1428_v11 = vrot.slane %v1426_v30, 5  ;;  %v1311_v16 = vsel %vm2281_vm8, %v1306_v5, %v1310_v15 }
 0x138   : > { %v904_v28 = vpop.f32.mrf.mxu0  ;;  %v933_v18 = vpop.f32.mrf.mxu1  ;;  %v1314_v54 = vunpack.c.l.b16 %v1311_v16 }
 0x139   : > { %1762 = vmatmul.msk.bf16.gmra.mxu2 %vm466_vm5, %v1316_v27  ;;  %1766 = vmatmul.msk.bf16.gmra.mxu3 %vm466_vm5, %v1316_v27 }
 0x13a   : > { %v1318_v40 = vpack.c.b16 %v1314_v54, %v2391_v7 }
 0x13b   : > { %1772 = vmatmul.msk.bf16.gmra.mxu0 %vm466_vm5, %v2397_v9  ;;  %1776 = vmatmul.msk.bf16.gmra.mxu1 %vm466_vm5, %v2397_v9  ;;  %v1429_v9 = vsel %vm2281_vm8, %v1424_v21, %v1428_v11 }
 0x13c   : > { %v794_v55 = vpop.f32.mrf.mxu2  ;;  %v823_v49 = vpop.f32.mrf.mxu3  ;;  %v1432_v60 = vunpack.c.l.b16 %v1429_v9 }
 0x13d   : > { %v842_v52 = vadd.f32 %v794_v55, %v2381_v41  ;;  %v843_v24 = vadd.f32 %v823_v49, %v2383_v12 }
 0x13f   : > { %v2474_v33 = vadd.f32 %v899_v20, %v842_v52  ;;  %v2476_v34 = vadd.f32 %v928_v29, %v843_v24  ;;  %v1317_v20 = vpack.c.b16 %v2389_v47, %v2359_v8  ;;  %v1433_v29 = vpack.c.b16 %v1432_v60, %v1314_v54 }
 0x140   : > { %v906_v35 = vpop.f32.mrf.mxu0  ;;  %v935_v3 = vpop.f32.mrf.mxu1 }
 0x144   : > { %v796_v61 = vpop.f32.mrf.mxu2  ;;  %v825_v6 = vpop.f32.mrf.mxu3 }
 0x145   : > { %v844_v41 = vadd.f32 %v796_v61, %v2399_v51  ;;  %v845_v12 = vadd.f32 %v825_v6, %v2401_v56 }
 0x147   : > { %v2486_v44 = vadd.f32 %v901_v37, %v844_v41  ;;  %v2488_v2 = vadd.f32 %v930_v38, %v845_v12 }
 0x148   : > { %v909_v57 = vpop.f32.mrf.mxu0  ;;  %v938_v58 = vpop.f32.mrf.mxu1 }
 0x149   : > { %1763 = vmatmul.msk.bf16.gmra.mxu2 %vm466_vm5, %v1317_v20  ;;  %1767 = vmatmul.msk.bf16.gmra.mxu3 %vm466_vm5, %v1317_v20 }
 0x14b   : > { %1773 = vmatmul.msk.bf16.gmra.mxu0 %vm466_vm5, %v1433_v29  ;;  %1777 = vmatmul.msk.bf16.gmra.mxu1 %vm466_vm5, %v1433_v29 }
 0x14c   : > { %v799_v53 = vpop.f32.mrf.mxu2  ;;  %v828_v51 = vpop.f32.mrf.mxu3 }
 0x14d   : > { %v846_v56 = vadd.f32 %v799_v53, %v2413_v59  ;;  %v847_v8 = vadd.f32 %v828_v51, %v2415_v39 }
 0x14f   : > { %v2496_v47 = vadd.f32 %v904_v28, %v846_v56  ;;  %v2498_v37 = vadd.f32 %v933_v18, %v847_v8 }
 0x150   : > { %v911_v38 = vpop.f32.mrf.mxu0  ;;  %v940_v62 = vpop.f32.mrf.mxu1 }
 0x154   : > { %v801_v63 = vpop.f32.mrf.mxu2  ;;  %v830_v4 = vpop.f32.mrf.mxu3 }
 0x155   : > { %v848_v31 = vadd.f32 %v801_v63, %v2422_v48  ;;  %v849_v43 = vadd.f32 %v830_v4, %v2424_v46 }
 0x157   : > { %v2503_v42 = vadd.f32 %v906_v35, %v848_v31  ;;  %v2505_v26 = vadd.f32 %v935_v3, %v849_v43  ;;  %v1522_v43 = vld [vmem:[%s2688_s2] sm:$0x3] }
 0x158   : > { %v1233_v59 = vpop.f32.mrf.mxu0  ;;  %v1262_v39 = vpop.f32.mrf.mxu1 }
 0x159   : > { %1764 = vmatmul.msk.bf16.gmra.mxu2 %vm466_vm5, %v1318_v40  ;;  %1768 = vmatmul.msk.bf16.gmra.mxu3 %vm466_vm5, %v1318_v40 }
 0x15c   : > { %v804_v0 = vpop.f32.mrf.mxu2  ;;  %v833_v27 = vpop.f32.mrf.mxu3 }
 0x15d   : > { %v850_v1 = vadd.f32 %v804_v0, %v2434_v25  ;;  %v851_v48 = vadd.f32 %v833_v27, %v2436_v10 }
 0x15f   : > { %v2511_v14 = vadd.f32 %v909_v57, %v850_v1  ;;  %v2513_v46 = vadd.f32 %v938_v58, %v851_v48 }
 0x160   : > { %v1235_v7 = vpop.f32.mrf.mxu0  ;;  %v1264_v28 = vpop.f32.mrf.mxu1 }
 0x164   : > { %v806_v18 = vpop.f32.mrf.mxu2  ;;  %v835_v13 = vpop.f32.mrf.mxu3 }
 0x165   : > { %v852_v32 = vadd.f32 %v806_v18, %v2442_v36  ;;  %v853_v23 = vadd.f32 %v835_v13, %v2444_v17  ;;  %v2573_v18 = vperm.slane %v1522_v43, 0 }
 0x167   : > { %v2517_v30 = vadd.f32 %v911_v38, %v852_v32  ;;  %v2519_v55 = vadd.f32 %v940_v62, %v853_v23 }
 0x168   : > { %v2521_v49 = vpop.f32.mrf.mxu0  ;;  %v2523_v25 = vpop.f32.mrf.mxu1 }
 0x16c   : > { %v987_v10 = vpop.f32.mrf.mxu2  ;;  %v1016_v5 = vpop.f32.mrf.mxu3 }
 0x16d   : > { %v1036_v62 = vadd.f32 %v987_v10, %v2454_v45  ;;  %v1037_v63 = vadd.f32 %v1016_v5, %v2456_v50  ;;  %v2575_v45 = vperm.slane %v1522_v43, 1 }
 0x16f   : > { %v1282_v40 = vadd.f32 %v1233_v59, %v1036_v62  ;;  %v1283_v0 = vadd.f32 %v1262_v39, %v1037_v63 }
 0x170   : > { %v2525_v15 = vpop.f32.mrf.mxu0  ;;  %v2527_v21 = vpop.f32.mrf.mxu1 }
 0x174   : > { %v989_v11 = vpop.f32.mrf.mxu2  ;;  %v1018_v52 = vpop.f32.mrf.mxu3 }
 0x175   : > { %v1038_v50 = vadd.f32 %v989_v11, %v2462_v19  ;;  %v1039_v32 = vadd.f32 %v1018_v52, %v2464_v22 }
 0x177   : > { %v1284_v39 = vadd.f32 %v1235_v7, %v1038_v50  ;;  %v1285_v62 = vadd.f32 %v1264_v28, %v1039_v32 }
 0x178   : > { %v2529_v24 = vpop.f32.mrf.mxu0  ;;  %v2531_v36 = vpop.f32.mrf.mxu1 }
 0x17c   : > { %v992_v17 = vpop.f32.mrf.mxu2  ;;  %v1021_v35 = vpop.f32.mrf.mxu3 }
 0x180   : > { %v2533_v3 = vpop.f32.mrf.mxu0  ;;  %v2535_v16 = vpop.f32.mrf.mxu1 }
 0x184   : > { %v2537_v9 = vpop.f32.mrf.mxu2  ;;  %v2539_v54 = vpop.f32.mrf.mxu3 }
 0x188   : > { %v2541_v60 = vpop.f32.mrf.mxu0  ;;  %v2543_v61 = vpop.f32.mrf.mxu1 }
 0x18c   : > { %v2545_v6 = vpop.f32.mrf.mxu2  ;;  %v2547_v41 = vpop.f32.mrf.mxu3 }
 0x190   : > { %v2553_v29 = vpop.f32.mrf.mxu0  ;;  %v2555_v57 = vpop.f32.mrf.mxu1 }
 0x194   : > { %v2549_v12 = vpop.f32.mrf.mxu2  ;;  %v2551_v20 = vpop.f32.mrf.mxu3 }
 0x198   : > { %v1457_v51 = vpop.f32.mrf.mxu0  ;;  %v1486_v56 = vpop.f32.mrf.mxu1 }
 0x19c   : > { %v2557_v58 = vpop.f32.mrf.mxu2  ;;  %v2559_v53 = vpop.f32.mrf.mxu3 }
 0x1a0   : > { %v1459_v4 = vpop.f32.mrf.mxu0  ;;  %v1488_v31 = vpop.f32.mrf.mxu1 }
 0x1a4   : > { %v2561_v8 = vpop.f32.mrf.mxu2  ;;  %v2563_v38 = vpop.f32.mrf.mxu3 }
 0x1a8   : > { %v1462_v63 = vpop.f32.mrf.mxu0  ;;  %v1491_v43 = vpop.f32.mrf.mxu1 }
 0x1ac   : > { %v1351_v27 = vpop.f32.mrf.mxu2  ;;  %v1380_v1 = vpop.f32.mrf.mxu3 }
 0x1ad   : > { %v1400_v48 = vadd.f32 %v1351_v27, %v1282_v40  ;;  %v1401_v13 = vadd.f32 %v1380_v1, %v1283_v0 }
 0x1af   : > { %v1506_v23 = vadd.f32 %v1457_v51, %v1400_v48  ;;  %v1507_v10 = vadd.f32 %v1486_v56, %v1401_v13  ;;  %v1040_v51 = vadd.f32 %v992_v17, %v2474_v33  ;;  %v1041_v56 = vadd.f32 %v1021_v35, %v2476_v34 }
 0x1b0   : > { %v1464_v17 = vpop.f32.mrf.mxu0  ;;  %v1493_v34 = vpop.f32.mrf.mxu1  ;;  %v1042_v35 = vadd.f32 %v2537_v9, %v2486_v44 }
 0x1b1   : > { %v1528_v5 = vadd.f32 %v2573_v18, %v1506_v23  ;;  %v1529_v59 = vadd.f32 %v2575_v45, %v1507_v10  ;;  %v1286_v7 = vadd.f32 %v2521_v49, %v1040_v51  ;;  %v1287_v28 = vadd.f32 %v2523_v25, %v1041_v56 }
 0x1b2   : > { %v1288_v23 = vadd.f32 %v2525_v15, %v1042_v35  ;;  %v1050_v35 = vadd.f32 %v2561_v8, %v2517_v30 }
 0x1b3   : > { %1544 = vst [vmem:[%s2581_s9] sm:$0xff] %v1528_v5 }
 0x1b4   : > { %1545 = vst [vmem:[%s2581_s9 + $0x8] sm:$0xff] %v1529_v59  ;;  %v1353_v19 = vpop.f32.mrf.mxu2  ;;  %v1382_v22 = vpop.f32.mrf.mxu3 }
 0x1b5   : > { %v1402_v11 = vadd.f32 %v1353_v19, %v1284_v39  ;;  %v1403_v52 = vadd.f32 %v1382_v22, %v1285_v62 }
 0x1b7   : > { %v1508_v40 = vadd.f32 %v1459_v4, %v1402_v11  ;;  %v1509_v0 = vadd.f32 %v1488_v31, %v1403_v52  ;;  %v1043_v4 = vadd.f32 %v2539_v54, %v2488_v2  ;;  %v1044_v2 = vadd.f32 %v2545_v6, %v2496_v47 }
 0x1b8   : > { %v1045_v54 = vadd.f32 %v2547_v41, %v2498_v37  ;;  %v1046_v41 = vadd.f32 %v2549_v12, %v2503_v42  ;;  %v1047_v52 = vadd.f32 %v2551_v20, %v2505_v26  ;;  %v1048_v20 = vadd.f32 %v2557_v58, %v2511_v14 }
 0x1b9   : > { %v1530_v27 = vadd.f32 %v2573_v18, %v1508_v40  ;;  %v1531_v1 = vadd.f32 %v2575_v45, %v1509_v0  ;;  %v1289_v10 = vadd.f32 %v2527_v21, %v1043_v4  ;;  %v1290_v19 = vadd.f32 %v2529_v24, %v1044_v2 }
 0x1ba   : > { %v1291_v22 = vadd.f32 %v2531_v36, %v1045_v54  ;;  %v1051_v4 = vadd.f32 %v2563_v38, %v2519_v55 }
 0x1bb   : > { %1546 = vst [vmem:[%s2581_s9 + $0x10] sm:$0xff] %v1530_v27  ;;  %v1292_v27 = vadd.f32 %v2533_v3, %v1046_v41 }
 0x1bc   : > { %1547 = vst [vmem:[%s2581_s9 + $0x18] sm:$0xff] %v1531_v1  ;;  %v1356_v48 = vpop.f32.mrf.mxu2  ;;  %v1385_v13 = vpop.f32.mrf.mxu3  ;;  %v1293_v1 = vadd.f32 %v2535_v16, %v1047_v52 }
 0x1bd   : > { %v1404_v50 = vadd.f32 %v1356_v48, %v1286_v7  ;;  %v1405_v33 = vadd.f32 %v1385_v13, %v1287_v28  ;;  %v1049_v28 = vadd.f32 %v2559_v53, %v2513_v46 }
 0x1bf   : > { %v1510_v31 = vadd.f32 %v1462_v63, %v1404_v50  ;;  %v1511_v32 = vadd.f32 %v1491_v43, %v1405_v33  ;;  %v1467_v63 = vpop.f32.mrf.mxu0  ;;  %v1496_v43 = vpop.f32.mrf.mxu1 }
 0x1c1   : > { %v1532_v49 = vadd.f32 %v2573_v18, %v1510_v31  ;;  %v1533_v25 = vadd.f32 %v2575_v45, %v1511_v32 }
 0x1c3   : > { %1548 = vst [vmem:[%s2581_s9 + $0x20] sm:$0xff] %v1532_v49  ;;  %v1296_v49 = vadd.f32 %v2553_v29, %v1050_v35 }
 0x1c4   : > { %1549 = vst [vmem:[%s2581_s9 + $0x28] sm:$0xff] %v1533_v25  ;;  %v1358_v5 = vpop.f32.mrf.mxu2  ;;  %v1387_v59 = vpop.f32.mrf.mxu3  ;;  %v1297_v25 = vadd.f32 %v2555_v57, %v1051_v4 }
 0x1c5   : > { %v1406_v44 = vadd.f32 %v1358_v5, %v1288_v23  ;;  %v1407_v9 = vadd.f32 %v1387_v59, %v1289_v10 }
 0x1c7   : > { %v1512_v39 = vadd.f32 %v1464_v17, %v1406_v44  ;;  %v1513_v62 = vadd.f32 %v1493_v34, %v1407_v9  ;;  %v1469_v0 = vpop.f32.mrf.mxu0  ;;  %v1498_v36 = vpop.f32.mrf.mxu1  ;;  %v1294_v17 = vadd.f32 %v2541_v60, %v1048_v20  ;;  %v1295_v34 = vadd.f32 %v2543_v61, %v1049_v28 }
 0x1c9   : > { %v1534_v15 = vadd.f32 %v2573_v18, %v1512_v39  ;;  %v1535_v21 = vadd.f32 %v2575_v45, %v1513_v62 }
 0x1cb   : > { %1550 = vst [vmem:[%s2581_s9 + $0x30] sm:$0xff] %v1534_v15 }
 0x1cc   : > { %1551 = vst [vmem:[%s2581_s9 + $0x38] sm:$0xff] %v1535_v21  ;;  %v1361_v47 = vpop.f32.mrf.mxu2  ;;  %v1390_v6 = vpop.f32.mrf.mxu3 }
 0x1cd   : > { %v1408_v11 = vadd.f32 %v1361_v47, %v1290_v19  ;;  %v1409_v37 = vadd.f32 %v1390_v6, %v1291_v22 }
 0x1cf   : > { %v1514_v51 = vadd.f32 %v1467_v63, %v1408_v11  ;;  %v1515_v56 = vadd.f32 %v1496_v43, %v1409_v37  ;;  %v1472_v16 = vpop.f32.mrf.mxu0  ;;  %v1501_v33 = vpop.f32.mrf.mxu1 }
 0x1d1   : > { %v1536_v40 = vadd.f32 %v2573_v18, %v1514_v51  ;;  %v1537_v24 = vadd.f32 %v2575_v45, %v1515_v56 }
 0x1d3   : > { %1552 = vst [vmem:[%s2581_s9 + $0x40] sm:$0xff] %v1536_v40 }
 0x1d4   : > { %1553 = vst [vmem:[%s2581_s9 + $0x48] sm:$0xff] %v1537_v24  ;;  %v1363_v42 = vpop.f32.mrf.mxu2  ;;  %v1392_v12 = vpop.f32.mrf.mxu3 }
 0x1d5   : > { %v1410_v7 = vadd.f32 %v1363_v42, %v1292_v27  ;;  %v1411_v26 = vadd.f32 %v1392_v12, %v1293_v1 }
 0x1d7   : > { %v1516_v48 = vadd.f32 %v1469_v0, %v1410_v7  ;;  %v1517_v13 = vadd.f32 %v1498_v36, %v1411_v26  ;;  %v1474_v23 = vpop.f32.mrf.mxu0  ;;  %v1503_v10 = vpop.f32.mrf.mxu1 }
 0x1d9   : > { %v1538_v50 = vadd.f32 %v2573_v18, %v1516_v48  ;;  %v1539_v3 = vadd.f32 %v2575_v45, %v1517_v13 }
 0x1db   : > { %1554 = vst [vmem:[%s2581_s9 + $0x50] sm:$0xff] %v1538_v50 }
 0x1dc   : > { %1555 = vst [vmem:[%s2581_s9 + $0x58] sm:$0xff] %v1539_v3  ;;  %v1366_v14 = vpop.f32.mrf.mxu2  ;;  %v1395_v58 = vpop.f32.mrf.mxu3 }
 0x1dd   : > { %v1412_v46 = vadd.f32 %v1366_v14, %v1294_v17  ;;  %v1413_v53 = vadd.f32 %v1395_v58, %v1295_v34 }
 0x1df   : > { %v1518_v31 = vadd.f32 %v1472_v16, %v1412_v46  ;;  %v1519_v32 = vadd.f32 %v1501_v33, %v1413_v53 }
 0x1e1   : > { %v1540_v60 = vadd.f32 %v2573_v18, %v1518_v31  ;;  %v1541_v61 = vadd.f32 %v2575_v45, %v1519_v32 }
 0x1e3   : > { %1556 = vst [vmem:[%s2581_s9 + $0x60] sm:$0xff] %v1540_v60 }
 0x1e4   : > { %1557 = vst [vmem:[%s2581_s9 + $0x68] sm:$0xff] %v1541_v61  ;;  %v1368_v30 = vpop.f32.mrf.mxu2  ;;  %v1397_v55 = vpop.f32.mrf.mxu3 }
 0x1e5   : > { %v1414_v8 = vadd.f32 %v1368_v30, %v1296_v49  ;;  %v1415_v38 = vadd.f32 %v1397_v55, %v1297_v25 }
 0x1e7   : > { %v1520_v29 = vadd.f32 %v1474_v23, %v1414_v8  ;;  %v1521_v5 = vadd.f32 %v1503_v10, %v1415_v38 }
 0x1e9   : > { %v1542_v57 = vadd.f32 %v2573_v18, %v1520_v29  ;;  %v1543_v59 = vadd.f32 %v2575_v45, %v1521_v5 }
 0x1eb   : > { %1558 = vst [vmem:[%s2581_s9 + $0x70] sm:$0xff] %v1542_v57 }
 0x1ec   : > { %1559 = vst [vmem:[%s2581_s9 + $0x78] sm:$0xff] %v1543_v59 }
 0x1ed   : > { %1872 = shalt.err (!%p1869_p5)
}
 0x1ee   : > { %s1926_s5 = smov 256   ;;  %s1927_s7 = smov 16  }
 0x1ef   : > { %1787 = dma.vmem_to_hbm [thread:$0]  (%p1988_p4), %s1576_s15, 2048, %s1578_s21, %s1561_s23, %s1926_s5, %s1926_s5, %s1927_s7  }
 0x1f0 PF: > { %p1793_p6 = scmp.ge.s32.totalorder %s1923_s17, 2  ;;  %s1592_s8 = sand.u32 1, %s1903_s12  }
 0x1f1   : > { %s1593_s9 = scalar_lea.sflag [#allocation4], %s1592_s8 }
 0x1f2   : > { %p1790_p7 = pnand %p1793_p6, %p1995_p8 }
 0x1f4   : > { %p1791_p9 = pneg %p1790_p7 }
 0x1f6   : > { %1898 = dma.done.wait (%p1791_p9), %s1593_s9, 2048  }
 0x1f7   : > { %1900 = vsyncadd (%p1791_p9), %s1593_s9, 4294965248  ;;  %s16_s17 = sadd.s32 1, %s1923_s17   ;;  %s2696_s12 = smov %s1907_s13 }
 0x1f8   : > { %p13_p10 = scmp.ge.s32.totalorder %s16_s17, 4   ;;  %s2697_s13 = smov %s1911_s14 }
 0x1f9   : > { %s2698_s14 = smov %s2001_s25  ;;  %s2699_s15 = smov %s1919_s16 }
 0x1fa   : > { %s2700_s16 = smov %s2702_s20  ;;  %15 = sbr.rel (!%p13_p10) target bundleno = 4 (0x4), region = 86 }
 0x1ff   :  { %1599 = vsyncpa [#allocation4], 1 }
 0x200   :  { %1601 = vsyncpa [#allocation4 + $0x1], 1 }

</bundles_post_ra>
